<compile_context>
chip_gen: v7x
topology: tpu7x:2x2x1
jax: 0.10.0
libtpu: 0.0.40
codegen_flags: <defaults>
</compile_context>

<pallas_src>
import jax
import jax.numpy as jnp
from jax.experimental import pallas as pl
from jax.experimental.pallas import tpu as pltpu

NUM_CLASSES = 11
OUT_PAD = 128          # lane-dense padded class dimension
BN_EPS = 1e-5


def _reorder_gates(w, H):
    # PyTorch gate order [i|f|g|o] -> [i|f|o|g] along the last (4H-wide) axis.
    return jnp.concatenate([w[..., : 2 * H], w[..., 3 * H:], w[..., 2 * H: 3 * H]], axis=-1)


def rnn_classifier_forward(x, lengths, p):
    T, B, D = x.shape
    H = p["gamma"].shape[0]
    G = 4 * H
    B_pad = ((B + 3) // 4) * 4      # 2*B_pad is a multiple of 8 -> dense sublane tiles
    R = 2 * B_pad                   # fused row count (layer-1 rows on top, layer-2 rows below)

    # ---- gate reorder + transpose ----
    wih1_t = _reorder_gates(p["w_ih_l0"].T, H)                         # [D, 4H]
    whh1_t = _reorder_gates(p["w_hh_l0"].T, H)                         # [H, 4H]
    b1 = _reorder_gates((p["b_ih_l0"] + p["b_hh_l0"]).reshape(1, G), H)
    wih2_t = _reorder_gates(p["w_ih_l1"].T, H)                         # [H, 4H]
    whh2_t = _reorder_gates(p["w_hh_l1"].T, H)                         # [H, 4H]
    b2 = _reorder_gates((p["b_ih_l1"] + p["b_hh_l1"]).reshape(1, G), H)

    # sigmoid(z) = 0.5*tanh(0.5*z) + 0.5 : fold the 0.5 pre-scale of the i/f/o gate columns into
    # the weights and additive terms so one tanh slab per step covers all four gates.
    col_scale = jnp.concatenate([jnp.full((3 * H,), 0.5, jnp.float32),
                                 jnp.ones((H,), jnp.float32)])          # [4H]

    # Fused recurrent weight (block-diagonal operand): [whh_l0 ; wih_l1 ; whh_l1] -> [3H, 4H] bf16.
    wprime = (jnp.concatenate([whh1_t, wih2_t, whh2_t], axis=0) * col_scale).astype(jnp.bfloat16)

    # Layer-1 input projection hoisted out of the recurrence (bf16 MXU operands, f32 accumulate).
    gin = jnp.einsum("tbd,dg->tbg", x.astype(jnp.bfloat16), wih1_t.astype(jnp.bfloat16),
                     preferred_element_type=jnp.float32) + b1           # [T, B, 4H] f32
    gin_s = gin * col_scale
    b2_s = b2 * col_scale                                               # [1, 4H]

    # Per-step additive slab for the fused [R, 4H] gates; T+1 steps (last = layer-2 epilogue).
    add_slab = jnp.zeros((T + 1, R, G), jnp.float32)
    add_slab = add_slab.at[:T, :B, :].set(gin_s)                        # top rows: gin(t)
    add_slab = add_slab.at[:, B_pad:, :].set(b2_s)                      # bottom rows: b2

    # Active-step window per fused row: layer-1 row b active for t in [0, len_b),
    # layer-2 row b active for t in [1, len_b + 1) (one-step layer skew). Padded rows never active.
    lens = jnp.zeros((B_pad,), jnp.int32).at[:B].set(lengths.astype(jnp.int32))
    lo = jnp.concatenate([jnp.zeros((B_pad,), jnp.int32),
                          jnp.ones((B_pad,), jnp.int32)]).reshape(R, 1)
    hi = jnp.concatenate([lens, lens + 1]).reshape(R, 1)

    gamma = p["gamma"].reshape(1, H).astype(jnp.float32)
    beta = p["beta"].reshape(1, H).astype(jnp.float32)

    # Lane-dense FC head: pad classes 11 -> 128 (zero weight cols, -1e30 bias -> softmax prob 0).
    wfc_pad = (jnp.zeros((H, OUT_PAD), jnp.float32)
               .at[:, :NUM_CLASSES].set(p["fc_w"].T)).astype(jnp.bfloat16)
    bfc_pad = jnp.full((1, OUT_PAD), -1e30, jnp.float32).at[:, :NUM_CLASSES].set(
        p["fc_b"].reshape(1, NUM_CLASSES))

    def kernel(add_ref, lo_ref, hi_ref, wp_ref, gamma_ref, beta_ref, wfc_ref, bfc_ref,
               y_ref, a_ref, c_ref, h_ref):
        # a_ref: persistent fused block-diagonal MXU operand
        #   rows [0, B_pad)  : [ h1 | 0  | 0  ]   (layer-1, step t)
        #   rows [B_pad, R)  : [ 0  | h1 | h2 ]   (layer-2, step t-1)
        a_ref[...] = jnp.zeros_like(a_ref)
        c_ref[...] = jnp.zeros_like(c_ref)   # stacked cells   [c1 ; c2]
        h_ref[...] = jnp.zeros_like(h_ref)   # stacked hiddens [h1 ; h2]

        lo_v = lo_ref[...]
        hi_v = hi_ref[...]
        wp = wp_ref[...]

        # Static unroll (T is small); the active-window mask no-ops rows past their length so the
        # final layer-2 rows of h_ref equal hn[-1] of the packed 2-layer LSTM.
        # TODO(synk): for large T, switch to a dynamic-bound pl.loop (max length prefetched) and
        # stream add_slab from HBM via a T-chunk grid axis / pl.ANY instead of keeping it resident
        # (v7x has 64 MiB VMEM, v5e default scoped limit is 16 MiB).
        for t in range(T + 1):
            active = jnp.logical_and(t >= lo_v, t < hi_v)                    # [R, 1] bool

            # One fused matmul per step: layer-1 (t) and layer-2 (t-1) gates together.
            gates = jnp.dot(a_ref[...].astype(jnp.bfloat16), wp,
                            preferred_element_type=jnp.float32) + add_ref[t]  # [R, 4H]
            th = jnp.tanh(gates)                                              # one EUP slab
            sig = th[:, : 3 * H] * 0.5 + 0.5                                  # sigmoid(i|f|o)
            i_g = sig[:, :H]
            f_g = sig[:, H: 2 * H]
            o_g = sig[:, 2 * H: 3 * H]
            g_g = th[:, 3 * H:]

            c_new = f_g * c_ref[...] + i_g * g_g
            h_new = o_g * jnp.tanh(c_new)

            h_upd = jnp.where(active, h_new, h_ref[...])                      # freeze finished rows
            c_ref[...] = jnp.where(active, c_new, c_ref[...])
            h_ref[...] = h_upd

            # Rebuild the fused operand for the next step at fixed lane offsets (no concat).
            h1 = h_upd[:B_pad, :]
            a_ref[pl.ds(0, B_pad), pl.ds(0, H)] = h1
            a_ref[pl.ds(B_pad, B_pad), pl.ds(H, H)] = h1
            a_ref[pl.ds(B_pad, B_pad), pl.ds(2 * H, H)] = h_upd[B_pad:, :]

        # ---- head: BatchNorm1d (batch stats over the B real layer-2 rows) -> Linear -> softmax --
        hn = h_ref[...]                                                       # [R, H]
        ridx = jax.lax.broadcasted_iota(jnp.int32, (R, 1), 0)
        rmask = jnp.logical_and(ridx >= B_pad, ridx < B_pad + B).astype(jnp.float32)
        inv_b = jnp.float32(1.0 / B)
        mean = jnp.sum(hn * rmask, axis=0, keepdims=True) * inv_b
        diff = hn - mean
        var = jnp.sum(diff * diff * rmask, axis=0, keepdims=True) * inv_b     # biased var (torch BN)
        yb = diff * jax.lax.rsqrt(var + BN_EPS) * gamma_ref[...] + beta_ref[...]
        logits = jnp.dot(yb.astype(jnp.bfloat16), wfc_ref[...],
                         preferred_element_type=jnp.float32) + bfc_ref[...]   # [R, 128] f32
        m = jnp.max(logits, axis=1, keepdims=True)
        e = jnp.exp(logits - m)                                               # padded cols -> 0
        y_ref[...] = e * pl.reciprocal(jnp.sum(e, axis=1, keepdims=True), approx=True)

    def const_spec(shape):
        nd = len(shape)
        return pl.BlockSpec(shape, lambda i, _nd=nd: (0,) * _nd)

    grid_spec = pltpu.PrefetchScalarGridSpec(
        num_scalar_prefetch=0,
        grid=(1,),                            # single invocation; time loop is internal (unrolled)
        in_specs=[
            const_spec((T + 1, R, G)),        # add_slab (gin top rows / b2 bottom rows)
            const_spec((R, 1)),               # lo (active window start)
            const_spec((R, 1)),               # hi (active window end)
            const_spec((3 * H, G)),           # fused recurrent weights (bf16)
            const_spec((1, H)),               # gamma
            const_spec((1, H)),               # beta
            const_spec((H, OUT_PAD)),         # fc weight (bf16, class-padded)
            const_spec((1, OUT_PAD)),         # fc bias (padded cols = -1e30)
        ],
        out_specs=const_spec((R, OUT_PAD)),
        scratch_shapes=[
            pltpu.VMEM((R, 3 * H), jnp.float32),   # fused operand A'
            pltpu.VMEM((R, H), jnp.float32),       # stacked cells   [c1 ; c2]
            pltpu.VMEM((R, H), jnp.float32),       # stacked hiddens [h1 ; h2]
        ],
    )

    # TODO(synk): on v7x (2 TensorCores) add a leading "parallel" batch-tile grid axis when B grows;
    # the recurrence is embarrassingly parallel over batch rows.
    y_pad = pl.pallas_call(
        kernel,
        out_shape=jax.ShapeDtypeStruct((R, OUT_PAD), jnp.float32),
        grid_spec=grid_spec,
        compiler_params=pltpu.CompilerParams(dimension_semantics=("arbitrary",)),
    )(add_slab, lo, hi, wprime, gamma, beta, wfc_pad, bfc_pad)

    # Real results are the layer-2 rows for the B real batch entries.
    return y_pad[B_pad:B_pad + B, :NUM_CLASSES]


if __name__ == "__main__":
    # Small shapes consistent with the module: seq T=8, batch B=4, input D=64, hidden H=32.
    T, B, D, H = 8, 4, 64, 32
    key = jax.random.PRNGKey(0)
    ks = jax.random.split(key, 12)
    scale = 1.0 / jnp.sqrt(jnp.float32(H))

    def u(k, shape):
        return jax.random.uniform(k, shape, jnp.float32, -scale, scale)

    params = {
        "w_ih_l0": u(ks[0], (4 * H, D)),
        "w_hh_l0": u(ks[1], (4 * H, H)),
        "b_ih_l0": u(ks[2], (4 * H,)),
        "b_hh_l0": u(ks[3], (4 * H,)),
        "w_ih_l1": u(ks[4], (4 * H, H)),
        "w_hh_l1": u(ks[5], (4 * H, H)),
        "b_ih_l1": u(ks[6], (4 * H,)),
        "b_hh_l1": u(ks[7], (4 * H,)),
        "gamma": jnp.ones((H,), jnp.float32),
        "beta": jnp.zeros((H,), jnp.float32),
        "fc_w": u(ks[8], (NUM_CLASSES, H)),
        "fc_b": u(ks[9], (NUM_CLASSES,)),
    }

    # TODO(synk): inter-layer dropout (p=0.5) is training-only stochastic; kernel matches eval/inference.
    x = jax.random.normal(ks[10], (T, B, D), jnp.float32)
    lengths = jnp.array([8, 6, 5, 3], jnp.int32)   # sorted descending (pack_padded_sequence default)

    y = rnn_classifier_forward(x, lengths, params)
    jax.block_until_ready(y)
    assert y.shape == (B, NUM_CLASSES)
    assert bool(jnp.all(jnp.isfinite(y)))
    # Row sums ~ 1 (slightly loose tolerance: final softmax uses pl.reciprocal(approx=True)).
    assert bool(jnp.allclose(jnp.sum(y, axis=1), 1.0, atol=5e-3))
    print("KERNEL_OK")
</pallas_src>

<mosaic_0001>
module attributes {stable_mosaic.version = 11 : i64} {
  func.func @kernel(%arg0: i32, %arg1: memref<9x8x128xf32, #tpu.memory_space<vmem>>, %arg2: memref<8x1xi32, #tpu.memory_space<vmem>>, %arg3: memref<8x1xi32, #tpu.memory_space<vmem>>, %arg4: memref<96x128xbf16, #tpu.memory_space<vmem>>, %arg5: memref<1x32xf32, #tpu.memory_space<vmem>>, %arg6: memref<1x32xf32, #tpu.memory_space<vmem>>, %arg7: memref<32x128xbf16, #tpu.memory_space<vmem>>, %arg8: memref<1x128xf32, #tpu.memory_space<vmem>>, %arg9: memref<8x128xf32, #tpu.memory_space<vmem>>, %arg10: memref<8x96xf32, #tpu.memory_space<vmem>>, %arg11: memref<8x32xf32, #tpu.memory_space<vmem>>, %arg12: memref<8x32xf32, #tpu.memory_space<vmem>>) attributes {dimension_semantics = [#tpu.dimension_semantics<arbitrary>], iteration_bounds = array<i64: 1>, scalar_prefetch = 0 : i64, scratch_operands = 3 : i64, tpu.core_type = #tpu.core_type<tc>, window_params = [{pipeline_mode = #tpu.pipeline_mode<synchronous>, transform_indices = @transform_0, window_bounds = array<i64: 9, 8, 128>}, {pipeline_mode = #tpu.pipeline_mode<synchronous>, transform_indices = @transform_1, window_bounds = array<i64: 8, 1>}, {pipeline_mode = #tpu.pipeline_mode<synchronous>, transform_indices = @transform_2, window_bounds = array<i64: 8, 1>}, {pipeline_mode = #tpu.pipeline_mode<synchronous>, transform_indices = @transform_3, window_bounds = array<i64: 96, 128>}, {pipeline_mode = #tpu.pipeline_mode<synchronous>, transform_indices = @transform_4, window_bounds = array<i64: 1, 32>}, {pipeline_mode = #tpu.pipeline_mode<synchronous>, transform_indices = @transform_5, window_bounds = array<i64: 1, 32>}, {pipeline_mode = #tpu.pipeline_mode<synchronous>, transform_indices = @transform_6, window_bounds = array<i64: 32, 128>}, {pipeline_mode = #tpu.pipeline_mode<synchronous>, transform_indices = @transform_7, window_bounds = array<i64: 1, 128>}, {pipeline_mode = #tpu.pipeline_mode<synchronous>, transform_indices = @transform_8, window_bounds = array<i64: 8, 128>}]} {
    %cst = arith.constant 0.000000e+00 : f32
    %0 = vector.broadcast %cst : f32 to vector<8x96xf32>
    %c0 = arith.constant 0 : index
    %c0_0 = arith.constant 0 : index
    %1 = vector.load %arg10[%c0, %c0_0] : memref<8x96xf32, #tpu.memory_space<vmem>>, vector<8x96xf32>
    tpu.vector_store %arg10[%c0, %c0_0], %0 {strides = array<i32>} : memref<8x96xf32, #tpu.memory_space<vmem>>, vector<8x96xf32>,
    %cst_1 = arith.constant 0.000000e+00 : f32
    %2 = vector.broadcast %cst_1 : f32 to vector<8x32xf32>
    %c0_2 = arith.constant 0 : index
    %c0_3 = arith.constant 0 : index
    %3 = vector.load %arg11[%c0_2, %c0_3] : memref<8x32xf32, #tpu.memory_space<vmem>>, vector<8x32xf32>
    tpu.vector_store %arg11[%c0_2, %c0_3], %2 {strides = array<i32>} : memref<8x32xf32, #tpu.memory_space<vmem>>, vector<8x32xf32>,
    %cst_4 = arith.constant 0.000000e+00 : f32
    %4 = vector.broadcast %cst_4 : f32 to vector<8x32xf32>
    %c0_5 = arith.constant 0 : index
    %c0_6 = arith.constant 0 : index
    %5 = vector.load %arg12[%c0_5, %c0_6] : memref<8x32xf32, #tpu.memory_space<vmem>>, vector<8x32xf32>
    tpu.vector_store %arg12[%c0_5, %c0_6], %4 {strides = array<i32>} : memref<8x32xf32, #tpu.memory_space<vmem>>, vector<8x32xf32>,
    %c0_7 = arith.constant 0 : index
    %c0_8 = arith.constant 0 : index
    %6 = vector.load %arg2[%c0_7, %c0_8] : memref<8x1xi32, #tpu.memory_space<vmem>>, vector<8x1xi32>
    %c0_9 = arith.constant 0 : index
    %c0_10 = arith.constant 0 : index
    %7 = vector.load %arg3[%c0_9, %c0_10] : memref<8x1xi32, #tpu.memory_space<vmem>>, vector<8x1xi32>
    %c0_11 = arith.constant 0 : index
    %c0_12 = arith.constant 0 : index
    %8 = vector.load %arg4[%c0_11, %c0_12] : memref<96x128xbf16, #tpu.memory_space<vmem>>, vector<96x128xbf16>
    %c0_i32 = arith.constant 0 : i32
    %9 = vector.broadcast %c0_i32 : i32 to vector<8x1xi32>
    %10 = arith.cmpi sle, %6, %9 : vector<8x1xi32>
    %c0_i32_13 = arith.constant 0 : i32
    %11 = vector.broadcast %c0_i32_13 : i32 to vector<8x1xi32>
    %12 = arith.cmpi sgt, %7, %11 : vector<8x1xi32>
    %13 = arith.andi %10, %12 : vector<8x1xi1>
    %c0_14 = arith.constant 0 : index
    %c0_15 = arith.constant 0 : index
    %14 = vector.load %arg10[%c0_14, %c0_15] : memref<8x96xf32, #tpu.memory_space<vmem>>, vector<8x96xf32>
    %15 = arith.truncf %14 : vector<8x96xf32> to vector<8x96xbf16>
    %cst_16 = arith.constant dense<0.000000e+00> : vector<8x128xf32>
    %16 = tpu.matmul %15, %8, %cst_16 {dimension_numbers = #tpu.dot_dimension_numbers<[1], [0], [0], [1], [0, 0, 1, 1], [], []>} : vector<8x96xbf16>, vector<96x128xbf16>, vector<8x128xf32> -> vector<8x128xf32>
    %c0_17 = arith.constant 0 : index
    %c0_18 = arith.constant 0 : index
    %c0_19 = arith.constant 0 : index
    %17 = vector.load %arg1[%c0_17, %c0_18, %c0_19] : memref<9x8x128xf32, #tpu.memory_space<vmem>>, vector<1x8x128xf32>
    %18 = vector.shape_cast %17 : vector<1x8x128xf32> to vector<8x128xf32>
    %19 = arith.addf %16, %18 : vector<8x128xf32>
    %20 = math.tanh %19 : vector<8x128xf32>
    %21 = vector.extract_strided_slice %20 {offsets = [0, 0], sizes = [8, 96], strides = [1, 1]} : vector<8x128xf32> to vector<8x96xf32>
    %cst_20 = arith.constant 5.000000e-01 : f32
    %22 = vector.broadcast %cst_20 : f32 to vector<8x96xf32>
    %23 = arith.mulf %21, %22 : vector<8x96xf32>
    %cst_21 = arith.constant 5.000000e-01 : f32
    %24 = vector.broadcast %cst_21 : f32 to vector<8x96xf32>
    %25 = arith.addf %23, %24 : vector<8x96xf32>
    %26 = vector.extract_strided_slice %25 {offsets = [0, 0], sizes = [8, 32], strides = [1, 1]} : vector<8x96xf32> to vector<8x32xf32>
    %27 = vector.extract_strided_slice %25 {offsets = [0, 32], sizes = [8, 32], strides = [1, 1]} : vector<8x96xf32> to vector<8x32xf32>
    %28 = vector.extract_strided_slice %25 {offsets = [0, 64], sizes = [8, 32], strides = [1, 1]} : vector<8x96xf32> to vector<8x32xf32>
    %29 = vector.extract_strided_slice %20 {offsets = [0, 96], sizes = [8, 32], strides = [1, 1]} : vector<8x128xf32> to vector<8x32xf32>
    %c0_22 = arith.constant 0 : index
    %c0_23 = arith.constant 0 : index
    %30 = vector.load %arg11[%c0_22, %c0_23] : memref<8x32xf32, #tpu.memory_space<vmem>>, vector<8x32xf32>
    %31 = arith.mulf %27, %30 : vector<8x32xf32>
    %32 = arith.mulf %26, %29 : vector<8x32xf32>
    %33 = arith.addf %31, %32 : vector<8x32xf32>
    %34 = math.tanh %33 : vector<8x32xf32>
    %35 = arith.mulf %28, %34 : vector<8x32xf32>
    %c0_24 = arith.constant 0 : index
    %c0_25 = arith.constant 0 : index
    %36 = vector.load %arg12[%c0_24, %c0_25] : memref<8x32xf32, #tpu.memory_space<vmem>>, vector<8x32xf32>
    %37 = vector.shape_cast %13 : vector<8x1xi1> to vector<8x1xi1>
    %38 = vector.broadcast %37 : vector<8x1xi1> to vector<8x32xi1>
    %39 = arith.select %38, %35, %36 : vector<8x32xi1>, vector<8x32xf32>
    %c0_26 = arith.constant 0 : index
    %c0_27 = arith.constant 0 : index
    %40 = vector.load %arg11[%c0_26, %c0_27] : memref<8x32xf32, #tpu.memory_space<vmem>>, vector<8x32xf32>
    %41 = vector.shape_cast %13 : vector<8x1xi1> to vector<8x1xi1>
    %42 = vector.broadcast %41 : vector<8x1xi1> to vector<8x32xi1>
    %43 = arith.select %42, %33, %40 : vector<8x32xi1>, vector<8x32xf32>
    %c0_28 = arith.constant 0 : index
    %c0_29 = arith.constant 0 : index
    %44 = vector.load %arg11[%c0_28, %c0_29] : memref<8x32xf32, #tpu.memory_space<vmem>>, vector<8x32xf32>
    tpu.vector_store %arg11[%c0_28, %c0_29], %43 {strides = array<i32>} : memref<8x32xf32, #tpu.memory_space<vmem>>, vector<8x32xf32>,
    %c0_30 = arith.constant 0 : index
    %c0_31 = arith.constant 0 : index
    %45 = vector.load %arg12[%c0_30, %c0_31] : memref<8x32xf32, #tpu.memory_space<vmem>>, vector<8x32xf32>
    tpu.vector_store %arg12[%c0_30, %c0_31], %39 {strides = array<i32>} : memref<8x32xf32, #tpu.memory_space<vmem>>, vector<8x32xf32>,
    %46 = vector.extract_strided_slice %39 {offsets = [0, 0], sizes = [4, 32], strides = [1, 1]} : vector<8x32xf32> to vector<4x32xf32>
    %c0_32 = arith.constant 0 : index
    %c0_33 = arith.constant 0 : index
    %47 = vector.load %arg10[%c0_32, %c0_33] : memref<8x96xf32, #tpu.memory_space<vmem>>, vector<4x32xf32>
    tpu.vector_store %arg10[%c0_32, %c0_33], %46 {strides = array<i32>} : memref<8x96xf32, #tpu.memory_space<vmem>>, vector<4x32xf32>,
    %c4 = arith.constant 4 : index
    %c32 = arith.constant 32 : index
    %48 = vector.load %arg10[%c4, %c32] : memref<8x96xf32, #tpu.memory_space<vmem>>, vector<4x32xf32>
    tpu.vector_store %arg10[%c4, %c32], %46 {strides = array<i32>} : memref<8x96xf32, #tpu.memory_space<vmem>>, vector<4x32xf32>,
    %49 = vector.extract_strided_slice %39 {offsets = [4, 0], sizes = [4, 32], strides = [1, 1]} : vector<8x32xf32> to vector<4x32xf32>
    %c4_34 = arith.constant 4 : index
    %c64 = arith.constant 64 : index
    %50 = vector.load %arg10[%c4_34, %c64] : memref<8x96xf32, #tpu.memory_space<vmem>>, vector<4x32xf32>
    tpu.vector_store %arg10[%c4_34, %c64], %49 {strides = array<i32>} : memref<8x96xf32, #tpu.memory_space<vmem>>, vector<4x32xf32>,
    %c1_i32 = arith.constant 1 : i32
    %51 = vector.broadcast %c1_i32 : i32 to vector<8x1xi32>
    %52 = arith.cmpi sle, %6, %51 : vector<8x1xi32>
    %c1_i32_35 = arith.constant 1 : i32
    %53 = vector.broadcast %c1_i32_35 : i32 to vector<8x1xi32>
    %54 = arith.cmpi sgt, %7, %53 : vector<8x1xi32>
    %55 = arith.andi %52, %54 : vector<8x1xi1>
    %c0_36 = arith.constant 0 : index
    %c0_37 = arith.constant 0 : index
    %56 = vector.load %arg10[%c0_36, %c0_37] : memref<8x96xf32, #tpu.memory_space<vmem>>, vector<8x96xf32>
    %57 = arith.truncf %56 : vector<8x96xf32> to vector<8x96xbf16>
    %cst_38 = arith.constant dense<0.000000e+00> : vector<8x128xf32>
    %58 = tpu.matmul %57, %8, %cst_38 {dimension_numbers = #tpu.dot_dimension_numbers<[1], [0], [0], [1], [0, 0, 1, 1], [], []>} : vector<8x96xbf16>, vector<96x128xbf16>, vector<8x128xf32> -> vector<8x128xf32>
    %c1 = arith.constant 1 : index
    %c0_39 = arith.constant 0 : index
    %c0_40 = arith.constant 0 : index
    %59 = vector.load %arg1[%c1, %c0_39, %c0_40] : memref<9x8x128xf32, #tpu.memory_space<vmem>>, vector<1x8x128xf32>
    %60 = vector.shape_cast %59 : vector<1x8x128xf32> to vector<8x128xf32>
    %61 = arith.addf %58, %60 : vector<8x128xf32>
    %62 = math.tanh %61 : vector<8x128xf32>
    %63 = vector.extract_strided_slice %62 {offsets = [0, 0], sizes = [8, 96], strides = [1, 1]} : vector<8x128xf32> to vector<8x96xf32>
    %cst_41 = arith.constant 5.000000e-01 : f32
    %64 = vector.broadcast %cst_41 : f32 to vector<8x96xf32>
    %65 = arith.mulf %63, %64 : vector<8x96xf32>
    %cst_42 = arith.constant 5.000000e-01 : f32
    %66 = vector.broadcast %cst_42 : f32 to vector<8x96xf32>
    %67 = arith.addf %65, %66 : vector<8x96xf32>
    %68 = vector.extract_strided_slice %67 {offsets = [0, 0], sizes = [8, 32], strides = [1, 1]} : vector<8x96xf32> to vector<8x32xf32>
    %69 = vector.extract_strided_slice %67 {offsets = [0, 32], sizes = [8, 32], strides = [1, 1]} : vector<8x96xf32> to vector<8x32xf32>
    %70 = vector.extract_strided_slice %67 {offsets = [0, 64], sizes = [8, 32], strides = [1, 1]} : vector<8x96xf32> to vector<8x32xf32>
    %71 = vector.extract_strided_slice %62 {offsets = [0, 96], sizes = [8, 32], strides = [1, 1]} : vector<8x128xf32> to vector<8x32xf32>
    %c0_43 = arith.constant 0 : index
    %c0_44 = arith.constant 0 : index
    %72 = vector.load %arg11[%c0_43, %c0_44] : memref<8x32xf32, #tpu.memory_space<vmem>>, vector<8x32xf32>
    %73 = arith.mulf %69, %72 : vector<8x32xf32>
    %74 = arith.mulf %68, %71 : vector<8x32xf32>
    %75 = arith.addf %73, %74 : vector<8x32xf32>
    %76 = math.tanh %75 : vector<8x32xf32>
    %77 = arith.mulf %70, %76 : vector<8x32xf32>
    %c0_45 = arith.constant 0 : index
    %c0_46 = arith.constant 0 : index
    %78 = vector.load %arg12[%c0_45, %c0_46] : memref<8x32xf32, #tpu.memory_space<vmem>>, vector<8x32xf32>
    %79 = vector.shape_cast %55 : vector<8x1xi1> to vector<8x1xi1>
    %80 = vector.broadcast %79 : vector<8x1xi1> to vector<8x32xi1>
    %81 = arith.select %80, %77, %78 : vector<8x32xi1>, vector<8x32xf32>
    %c0_47 = arith.constant 0 : index
    %c0_48 = arith.constant 0 : index
    %82 = vector.load %arg11[%c0_47, %c0_48] : memref<8x32xf32, #tpu.memory_space<vmem>>, vector<8x32xf32>
    %83 = vector.shape_cast %55 : vector<8x1xi1> to vector<8x1xi1>
    %84 = vector.broadcast %83 : vector<8x1xi1> to vector<8x32xi1>
    %85 = arith.select %84, %75, %82 : vector<8x32xi1>, vector<8x32xf32>
    %c0_49 = arith.constant 0 : index
    %c0_50 = arith.constant 0 : index
    %86 = vector.load %arg11[%c0_49, %c0_50] : memref<8x32xf32, #tpu.memory_space<vmem>>, vector<8x32xf32>
    tpu.vector_store %arg11[%c0_49, %c0_50], %85 {strides = array<i32>} : memref<8x32xf32, #tpu.memory_space<vmem>>, vector<8x32xf32>,
    %c0_51 = arith.constant 0 : index
    %c0_52 = arith.constant 0 : index
    %87 = vector.load %arg12[%c0_51, %c0_52] : memref<8x32xf32, #tpu.memory_space<vmem>>, vector<8x32xf32>
    tpu.vector_store %arg12[%c0_51, %c0_52], %81 {strides = array<i32>} : memref<8x32xf32, #tpu.memory_space<vmem>>, vector<8x32xf32>,
    %88 = vector.extract_strided_slice %81 {offsets = [0, 0], sizes = [4, 32], strides = [1, 1]} : vector<8x32xf32> to vector<4x32xf32>
    %c0_53 = arith.constant 0 : index
    %c0_54 = arith.constant 0 : index
    %89 = vector.load %arg10[%c0_53, %c0_54] : memref<8x96xf32, #tpu.memory_space<vmem>>, vector<4x32xf32>
    tpu.vector_store %arg10[%c0_53, %c0_54], %88 {strides = array<i32>} : memref<8x96xf32, #tpu.memory_space<vmem>>, vector<4x32xf32>,
    %c4_55 = arith.constant 4 : index
    %c32_56 = arith.constant 32 : index
    %90 = vector.load %arg10[%c4_55, %c32_56] : memref<8x96xf32, #tpu.memory_space<vmem>>, vector<4x32xf32>
    tpu.vector_store %arg10[%c4_55, %c32_56], %88 {strides = array<i32>} : memref<8x96xf32, #tpu.memory_space<vmem>>, vector<4x32xf32>,
    %91 = vector.extract_strided_slice %81 {offsets = [4, 0], sizes = [4, 32], strides = [1, 1]} : vector<8x32xf32> to vector<4x32xf32>
    %c4_57 = arith.constant 4 : index
    %c64_58 = arith.constant 64 : index
    %92 = vector.load %arg10[%c4_57, %c64_58] : memref<8x96xf32, #tpu.memory_space<vmem>>, vector<4x32xf32>
    tpu.vector_store %arg10[%c4_57, %c64_58], %91 {strides = array<i32>} : memref<8x96xf32, #tpu.memory_space<vmem>>, vector<4x32xf32>,
    %c2_i32 = arith.constant 2 : i32
    %93 = vector.broadcast %c2_i32 : i32 to vector<8x1xi32>
    %94 = arith.cmpi sle, %6, %93 : vector<8x1xi32>
    %c2_i32_59 = arith.constant 2 : i32
    %95 = vector.broadcast %c2_i32_59 : i32 to vector<8x1xi32>
    %96 = arith.cmpi sgt, %7, %95 : vector<8x1xi32>
    %97 = arith.andi %94, %96 : vector<8x1xi1>
    %c0_60 = arith.constant 0 : index
    %c0_61 = arith.constant 0 : index
    %98 = vector.load %arg10[%c0_60, %c0_61] : memref<8x96xf32, #tpu.memory_space<vmem>>, vector<8x96xf32>
    %99 = arith.truncf %98 : vector<8x96xf32> to vector<8x96xbf16>
    %cst_62 = arith.constant dense<0.000000e+00> : vector<8x128xf32>
    %100 = tpu.matmul %99, %8, %cst_62 {dimension_numbers = #tpu.dot_dimension_numbers<[1], [0], [0], [1], [0, 0, 1, 1], [], []>} : vector<8x96xbf16>, vector<96x128xbf16>, vector<8x128xf32> -> vector<8x128xf32>
    %c2 = arith.constant 2 : index
    %c0_63 = arith.constant 0 : index
    %c0_64 = arith.constant 0 : index
    %101 = vector.load %arg1[%c2, %c0_63, %c0_64] : memref<9x8x128xf32, #tpu.memory_space<vmem>>, vector<1x8x128xf32>
    %102 = vector.shape_cast %101 : vector<1x8x128xf32> to vector<8x128xf32>
    %103 = arith.addf %100, %102 : vector<8x128xf32>
    %104 = math.tanh %103 : vector<8x128xf32>
    %105 = vector.extract_strided_slice %104 {offsets = [0, 0], sizes = [8, 96], strides = [1, 1]} : vector<8x128xf32> to vector<8x96xf32>
    %cst_65 = arith.constant 5.000000e-01 : f32
    %106 = vector.broadcast %cst_65 : f32 to vector<8x96xf32>
    %107 = arith.mulf %105, %106 : vector<8x96xf32>
    %cst_66 = arith.constant 5.000000e-01 : f32
    %108 = vector.broadcast %cst_66 : f32 to vector<8x96xf32>
    %109 = arith.addf %107, %108 : vector<8x96xf32>
    %110 = vector.extract_strided_slice %109 {offsets = [0, 0], sizes = [8, 32], strides = [1, 1]} : vector<8x96xf32> to vector<8x32xf32>
    %111 = vector.extract_strided_slice %109 {offsets = [0, 32], sizes = [8, 32], strides = [1, 1]} : vector<8x96xf32> to vector<8x32xf32>
    %112 = vector.extract_strided_slice %109 {offsets = [0, 64], sizes = [8, 32], strides = [1, 1]} : vector<8x96xf32> to vector<8x32xf32>
    %113 = vector.extract_strided_slice %104 {offsets = [0, 96], sizes = [8, 32], strides = [1, 1]} : vector<8x128xf32> to vector<8x32xf32>
    %c0_67 = arith.constant 0 : index
    %c0_68 = arith.constant 0 : index
    %114 = vector.load %arg11[%c0_67, %c0_68] : memref<8x32xf32, #tpu.memory_space<vmem>>, vector<8x32xf32>
    %115 = arith.mulf %111, %114 : vector<8x32xf32>
    %116 = arith.mulf %110, %113 : vector<8x32xf32>
    %117 = arith.addf %115, %116 : vector<8x32xf32>
    %118 = math.tanh %117 : vector<8x32xf32>
    %119 = arith.mulf %112, %118 : vector<8x32xf32>
    %c0_69 = arith.constant 0 : index
    %c0_70 = arith.constant 0 : index
    %120 = vector.load %arg12[%c0_69, %c0_70] : memref<8x32xf32, #tpu.memory_space<vmem>>, vector<8x32xf32>
    %121 = vector.shape_cast %97 : vector<8x1xi1> to vector<8x1xi1>
    %122 = vector.broadcast %121 : vector<8x1xi1> to vector<8x32xi1>
    %123 = arith.select %122, %119, %120 : vector<8x32xi1>, vector<8x32xf32>
    %c0_71 = arith.constant 0 : index
    %c0_72 = arith.constant 0 : index
    %124 = vector.load %arg11[%c0_71, %c0_72] : memref<8x32xf32, #tpu.memory_space<vmem>>, vector<8x32xf32>
    %125 = vector.shape_cast %97 : vector<8x1xi1> to vector<8x1xi1>
    %126 = vector.broadcast %125 : vector<8x1xi1> to vector<8x32xi1>
    %127 = arith.select %126, %117, %124 : vector<8x32xi1>, vector<8x32xf32>
    %c0_73 = arith.constant 0 : index
    %c0_74 = arith.constant 0 : index
    %128 = vector.load %arg11[%c0_73, %c0_74] : memref<8x32xf32, #tpu.memory_space<vmem>>, vector<8x32xf32>
    tpu.vector_store %arg11[%c0_73, %c0_74], %127 {strides = array<i32>} : memref<8x32xf32, #tpu.memory_space<vmem>>, vector<8x32xf32>,
    %c0_75 = arith.constant 0 : index
    %c0_76 = arith.constant 0 : index
    %129 = vector.load %arg12[%c0_75, %c0_76] : memref<8x32xf32, #tpu.memory_space<vmem>>, vector<8x32xf32>
    tpu.vector_store %arg12[%c0_75, %c0_76], %123 {strides = array<i32>} : memref<8x32xf32, #tpu.memory_space<vmem>>, vector<8x32xf32>,
    %130 = vector.extract_strided_slice %123 {offsets = [0, 0], sizes = [4, 32], strides = [1, 1]} : vector<8x32xf32> to vector<4x32xf32>
    %c0_77 = arith.constant 0 : index
    %c0_78 = arith.constant 0 : index
    %131 = vector.load %arg10[%c0_77, %c0_78] : memref<8x96xf32, #tpu.memory_space<vmem>>, vector<4x32xf32>
    tpu.vector_store %arg10[%c0_77, %c0_78], %130 {strides = array<i32>} : memref<8x96xf32, #tpu.memory_space<vmem>>, vector<4x32xf32>,
    %c4_79 = arith.constant 4 : index
    %c32_80 = arith.constant 32 : index
    %132 = vector.load %arg10[%c4_79, %c32_80] : memref<8x96xf32, #tpu.memory_space<vmem>>, vector<4x32xf32>
    tpu.vector_store %arg10[%c4_79, %c32_80], %130 {strides = array<i32>} : memref<8x96xf32, #tpu.memory_space<vmem>>, vector<4x32xf32>,
    %133 = vector.extract_strided_slice %123 {offsets = [4, 0], sizes = [4, 32], strides = [1, 1]} : vector<8x32xf32> to vector<4x32xf32>
    %c4_81 = arith.constant 4 : index
    %c64_82 = arith.constant 64 : index
    %134 = vector.load %arg10[%c4_81, %c64_82] : memref<8x96xf32, #tpu.memory_space<vmem>>, vector<4x32xf32>
    tpu.vector_store %arg10[%c4_81, %c64_82], %133 {strides = array<i32>} : memref<8x96xf32, #tpu.memory_space<vmem>>, vector<4x32xf32>,
    %c3_i32 = arith.constant 3 : i32
    %135 = vector.broadcast %c3_i32 : i32 to vector<8x1xi32>
    %136 = arith.cmpi sle, %6, %135 : vector<8x1xi32>
    %c3_i32_83 = arith.constant 3 : i32
    %137 = vector.broadcast %c3_i32_83 : i32 to vector<8x1xi32>
    %138 = arith.cmpi sgt, %7, %137 : vector<8x1xi32>
    %139 = arith.andi %136, %138 : vector<8x1xi1>
    %c0_84 = arith.constant 0 : index
    %c0_85 = arith.constant 0 : index
    %140 = vector.load %arg10[%c0_84, %c0_85] : memref<8x96xf32, #tpu.memory_space<vmem>>, vector<8x96xf32>
    %141 = arith.truncf %140 : vector<8x96xf32> to vector<8x96xbf16>
    %cst_86 = arith.constant dense<0.000000e+00> : vector<8x128xf32>
    %142 = tpu.matmul %141, %8, %cst_86 {dimension_numbers = #tpu.dot_dimension_numbers<[1], [0], [0], [1], [0, 0, 1, 1], [], []>} : vector<8x96xbf16>, vector<96x128xbf16>, vector<8x128xf32> -> vector<8x128xf32>
    %c3 = arith.constant 3 : index
    %c0_87 = arith.constant 0 : index
    %c0_88 = arith.constant 0 : index
    %143 = vector.load %arg1[%c3, %c0_87, %c0_88] : memref<9x8x128xf32, #tpu.memory_space<vmem>>, vector<1x8x128xf32>
    %144 = vector.shape_cast %143 : vector<1x8x128xf32> to vector<8x128xf32>
    %145 = arith.addf %142, %144 : vector<8x128xf32>
    %146 = math.tanh %145 : vector<8x128xf32>
    %147 = vector.extract_strided_slice %146 {offsets = [0, 0], sizes = [8, 96], strides = [1, 1]} : vector<8x128xf32> to vector<8x96xf32>
    %cst_89 = arith.constant 5.000000e-01 : f32
    %148 = vector.broadcast %cst_89 : f32 to vector<8x96xf32>
    %149 = arith.mulf %147, %148 : vector<8x96xf32>
    %cst_90 = arith.constant 5.000000e-01 : f32
    %150 = vector.broadcast %cst_90 : f32 to vector<8x96xf32>
    %151 = arith.addf %149, %150 : vector<8x96xf32>
    %152 = vector.extract_strided_slice %151 {offsets = [0, 0], sizes = [8, 32], strides = [1, 1]} : vector<8x96xf32> to vector<8x32xf32>
    %153 = vector.extract_strided_slice %151 {offsets = [0, 32], sizes = [8, 32], strides = [1, 1]} : vector<8x96xf32> to vector<8x32xf32>
    %154 = vector.extract_strided_slice %151 {offsets = [0, 64], sizes = [8, 32], strides = [1, 1]} : vector<8x96xf32> to vector<8x32xf32>
    %155 = vector.extract_strided_slice %146 {offsets = [0, 96], sizes = [8, 32], strides = [1, 1]} : vector<8x128xf32> to vector<8x32xf32>
    %c0_91 = arith.constant 0 : index
    %c0_92 = arith.constant 0 : index
    %156 = vector.load %arg11[%c0_91, %c0_92] : memref<8x32xf32, #tpu.memory_space<vmem>>, vector<8x32xf32>
    %157 = arith.mulf %153, %156 : vector<8x32xf32>
    %158 = arith.mulf %152, %155 : vector<8x32xf32>
    %159 = arith.addf %157, %158 : vector<8x32xf32>
    %160 = math.tanh %159 : vector<8x32xf32>
    %161 = arith.mulf %154, %160 : vector<8x32xf32>
    %c0_93 = arith.constant 0 : index
    %c0_94 = arith.constant 0 : index
    %162 = vector.load %arg12[%c0_93, %c0_94] : memref<8x32xf32, #tpu.memory_space<vmem>>, vector<8x32xf32>
    %163 = vector.shape_cast %139 : vector<8x1xi1> to vector<8x1xi1>
    %164 = vector.broadcast %163 : vector<8x1xi1> to vector<8x32xi1>
    %165 = arith.select %164, %161, %162 : vector<8x32xi1>, vector<8x32xf32>
    %c0_95 = arith.constant 0 : index
    %c0_96 = arith.constant 0 : index
    %166 = vector.load %arg11[%c0_95, %c0_96] : memref<8x32xf32, #tpu.memory_space<vmem>>, vector<8x32xf32>
    %167 = vector.shape_cast %139 : vector<8x1xi1> to vector<8x1xi1>
    %168 = vector.broadcast %167 : vector<8x1xi1> to vector<8x32xi1>
    %169 = arith.select %168, %159, %166 : vector<8x32xi1>, vector<8x32xf32>
    %c0_97 = arith.constant 0 : index
    %c0_98 = arith.constant 0 : index
    %170 = vector.load %arg11[%c0_97, %c0_98] : memref<8x32xf32, #tpu.memory_space<vmem>>, vector<8x32xf32>
    tpu.vector_store %arg11[%c0_97, %c0_98], %169 {strides = array<i32>} : memref<8x32xf32, #tpu.memory_space<vmem>>, vector<8x32xf32>,
    %c0_99 = arith.constant 0 : index
    %c0_100 = arith.constant 0 : index
    %171 = vector.load %arg12[%c0_99, %c0_100] : memref<8x32xf32, #tpu.memory_space<vmem>>, vector<8x32xf32>
    tpu.vector_store %arg12[%c0_99, %c0_100], %165 {strides = array<i32>} : memref<8x32xf32, #tpu.memory_space<vmem>>, vector<8x32xf32>,
    %172 = vector.extract_strided_slice %165 {offsets = [0, 0], sizes = [4, 32], strides = [1, 1]} : vector<8x32xf32> to vector<4x32xf32>
    %c0_101 = arith.constant 0 : index
    %c0_102 = arith.constant 0 : index
    %173 = vector.load %arg10[%c0_101, %c0_102] : memref<8x96xf32, #tpu.memory_space<vmem>>, vector<4x32xf32>
    tpu.vector_store %arg10[%c0_101, %c0_102], %172 {strides = array<i32>} : memref<8x96xf32, #tpu.memory_space<vmem>>, vector<4x32xf32>,
    %c4_103 = arith.constant 4 : index
    %c32_104 = arith.constant 32 : index
    %174 = vector.load %arg10[%c4_103, %c32_104] : memref<8x96xf32, #tpu.memory_space<vmem>>, vector<4x32xf32>
    tpu.vector_store %arg10[%c4_103, %c32_104], %172 {strides = array<i32>} : memref<8x96xf32, #tpu.memory_space<vmem>>, vector<4x32xf32>,
    %175 = vector.extract_strided_slice %165 {offsets = [4, 0], sizes = [4, 32], strides = [1, 1]} : vector<8x32xf32> to vector<4x32xf32>
    %c4_105 = arith.constant 4 : index
    %c64_106 = arith.constant 64 : index
    %176 = vector.load %arg10[%c4_105, %c64_106] : memref<8x96xf32, #tpu.memory_space<vmem>>, vector<4x32xf32>
    tpu.vector_store %arg10[%c4_105, %c64_106], %175 {strides = array<i32>} : memref<8x96xf32, #tpu.memory_space<vmem>>, vector<4x32xf32>,
    %c4_i32 = arith.constant 4 : i32
    %177 = vector.broadcast %c4_i32 : i32 to vector<8x1xi32>
    %178 = arith.cmpi sle, %6, %177 : vector<8x1xi32>
    %c4_i32_107 = arith.constant 4 : i32
    %179 = vector.broadcast %c4_i32_107 : i32 to vector<8x1xi32>
    %180 = arith.cmpi sgt, %7, %179 : vector<8x1xi32>
    %181 = arith.andi %178, %180 : vector<8x1xi1>
    %c0_108 = arith.constant 0 : index
    %c0_109 = arith.constant 0 : index
    %182 = vector.load %arg10[%c0_108, %c0_109] : memref<8x96xf32, #tpu.memory_space<vmem>>, vector<8x96xf32>
    %183 = arith.truncf %182 : vector<8x96xf32> to vector<8x96xbf16>
    %cst_110 = arith.constant dense<0.000000e+00> : vector<8x128xf32>
    %184 = tpu.matmul %183, %8, %cst_110 {dimension_numbers = #tpu.dot_dimension_numbers<[1], [0], [0], [1], [0, 0, 1, 1], [], []>} : vector<8x96xbf16>, vector<96x128xbf16>, vector<8x128xf32> -> vector<8x128xf32>
    %c4_111 = arith.constant 4 : index
    %c0_112 = arith.constant 0 : index
    %c0_113 = arith.constant 0 : index
    %185 = vector.load %arg1[%c4_111, %c0_112, %c0_113] : memref<9x8x128xf32, #tpu.memory_space<vmem>>, vector<1x8x128xf32>
    %186 = vector.shape_cast %185 : vector<1x8x128xf32> to vector<8x128xf32>
    %187 = arith.addf %184, %186 : vector<8x128xf32>
    %188 = math.tanh %187 : vector<8x128xf32>
    %189 = vector.extract_strided_slice %188 {offsets = [0, 0], sizes = [8, 96], strides = [1, 1]} : vector<8x128xf32> to vector<8x96xf32>
    %cst_114 = arith.constant 5.000000e-01 : f32
    %190 = vector.broadcast %cst_114 : f32 to vector<8x96xf32>
    %191 = arith.mulf %189, %190 : vector<8x96xf32>
    %cst_115 = arith.constant 5.000000e-01 : f32
    %192 = vector.broadcast %cst_115 : f32 to vector<8x96xf32>
    %193 = arith.addf %191, %192 : vector<8x96xf32>
    %194 = vector.extract_strided_slice %193 {offsets = [0, 0], sizes = [8, 32], strides = [1, 1]} : vector<8x96xf32> to vector<8x32xf32>
    %195 = vector.extract_strided_slice %193 {offsets = [0, 32], sizes = [8, 32], strides = [1, 1]} : vector<8x96xf32> to vector<8x32xf32>
    %196 = vector.extract_strided_slice %193 {offsets = [0, 64], sizes = [8, 32], strides = [1, 1]} : vector<8x96xf32> to vector<8x32xf32>
    %197 = vector.extract_strided_slice %188 {offsets = [0, 96], sizes = [8, 32], strides = [1, 1]} : vector<8x128xf32> to vector<8x32xf32>
    %c0_116 = arith.constant 0 : index
    %c0_117 = arith.constant 0 : index
    %198 = vector.load %arg11[%c0_116, %c0_117] : memref<8x32xf32, #tpu.memory_space<vmem>>, vector<8x32xf32>
    %199 = arith.mulf %195, %198 : vector<8x32xf32>
    %200 = arith.mulf %194, %197 : vector<8x32xf32>
    %201 = arith.addf %199, %200 : vector<8x32xf32>
    %202 = math.tanh %201 : vector<8x32xf32>
    %203 = arith.mulf %196, %202 : vector<8x32xf32>
    %c0_118 = arith.constant 0 : index
    %c0_119 = arith.constant 0 : index
    %204 = vector.load %arg12[%c0_118, %c0_119] : memref<8x32xf32, #tpu.memory_space<vmem>>, vector<8x32xf32>
    %205 = vector.shape_cast %181 : vector<8x1xi1> to vector<8x1xi1>
    %206 = vector.broadcast %205 : vector<8x1xi1> to vector<8x32xi1>
    %207 = arith.select %206, %203, %204 : vector<8x32xi1>, vector<8x32xf32>
    %c0_120 = arith.constant 0 : index
    %c0_121 = arith.constant 0 : index
    %208 = vector.load %arg11[%c0_120, %c0_121] : memref<8x32xf32, #tpu.memory_space<vmem>>, vector<8x32xf32>
    %209 = vector.shape_cast %181 : vector<8x1xi1> to vector<8x1xi1>
    %210 = vector.broadcast %209 : vector<8x1xi1> to vector<8x32xi1>
    %211 = arith.select %210, %201, %208 : vector<8x32xi1>, vector<8x32xf32>
    %c0_122 = arith.constant 0 : index
    %c0_123 = arith.constant 0 : index
    %212 = vector.load %arg11[%c0_122, %c0_123] : memref<8x32xf32, #tpu.memory_space<vmem>>, vector<8x32xf32>
    tpu.vector_store %arg11[%c0_122, %c0_123], %211 {strides = array<i32>} : memref<8x32xf32, #tpu.memory_space<vmem>>, vector<8x32xf32>,
    %c0_124 = arith.constant 0 : index
    %c0_125 = arith.constant 0 : index
    %213 = vector.load %arg12[%c0_124, %c0_125] : memref<8x32xf32, #tpu.memory_space<vmem>>, vector<8x32xf32>
    tpu.vector_store %arg12[%c0_124, %c0_125], %207 {strides = array<i32>} : memref<8x32xf32, #tpu.memory_space<vmem>>, vector<8x32xf32>,
    %214 = vector.extract_strided_slice %207 {offsets = [0, 0], sizes = [4, 32], strides = [1, 1]} : vector<8x32xf32> to vector<4x32xf32>
    %c0_126 = arith.constant 0 : index
    %c0_127 = arith.constant 0 : index
    %215 = vector.load %arg10[%c0_126, %c0_127] : memref<8x96xf32, #tpu.memory_space<vmem>>, vector<4x32xf32>
    tpu.vector_store %arg10[%c0_126, %c0_127], %214 {strides = array<i32>} : memref<8x96xf32, #tpu.memory_space<vmem>>, vector<4x32xf32>,
    %c4_128 = arith.constant 4 : index
    %c32_129 = arith.constant 32 : index
    %216 = vector.load %arg10[%c4_128, %c32_129] : memref<8x96xf32, #tpu.memory_space<vmem>>, vector<4x32xf32>
    tpu.vector_store %arg10[%c4_128, %c32_129], %214 {strides = array<i32>} : memref<8x96xf32, #tpu.memory_space<vmem>>, vector<4x32xf32>,
    %217 = vector.extract_strided_slice %207 {offsets = [4, 0], sizes = [4, 32], strides = [1, 1]} : vector<8x32xf32> to vector<4x32xf32>
    %c4_130 = arith.constant 4 : index
    %c64_131 = arith.constant 64 : index
    %218 = vector.load %arg10[%c4_130, %c64_131] : memref<8x96xf32, #tpu.memory_space<vmem>>, vector<4x32xf32>
    tpu.vector_store %arg10[%c4_130, %c64_131], %217 {strides = array<i32>} : memref<8x96xf32, #tpu.memory_space<vmem>>, vector<4x32xf32>,
    %c5_i32 = arith.constant 5 : i32
    %219 = vector.broadcast %c5_i32 : i32 to vector<8x1xi32>
    %220 = arith.cmpi sle, %6, %219 : vector<8x1xi32>
    %c5_i32_132 = arith.constant 5 : i32
    %221 = vector.broadcast %c5_i32_132 : i32 to vector<8x1xi32>
    %222 = arith.cmpi sgt, %7, %221 : vector<8x1xi32>
    %223 = arith.andi %220, %222 : vector<8x1xi1>
    %c0_133 = arith.constant 0 : index
    %c0_134 = arith.constant 0 : index
    %224 = vector.load %arg10[%c0_133, %c0_134] : memref<8x96xf32, #tpu.memory_space<vmem>>, vector<8x96xf32>
    %225 = arith.truncf %224 : vector<8x96xf32> to vector<8x96xbf16>
    %cst_135 = arith.constant dense<0.000000e+00> : vector<8x128xf32>
    %226 = tpu.matmul %225, %8, %cst_135 {dimension_numbers = #tpu.dot_dimension_numbers<[1], [0], [0], [1], [0, 0, 1, 1], [], []>} : vector<8x96xbf16>, vector<96x128xbf16>, vector<8x128xf32> -> vector<8x128xf32>
    %c5 = arith.constant 5 : index
    %c0_136 = arith.constant 0 : index
    %c0_137 = arith.constant 0 : index
    %227 = vector.load %arg1[%c5, %c0_136, %c0_137] : memref<9x8x128xf32, #tpu.memory_space<vmem>>, vector<1x8x128xf32>
    %228 = vector.shape_cast %227 : vector<1x8x128xf32> to vector<8x128xf32>
    %229 = arith.addf %226, %228 : vector<8x128xf32>
    %230 = math.tanh %229 : vector<8x128xf32>
    %231 = vector.extract_strided_slice %230 {offsets = [0, 0], sizes = [8, 96], strides = [1, 1]} : vector<8x128xf32> to vector<8x96xf32>
    %cst_138 = arith.constant 5.000000e-01 : f32
    %232 = vector.broadcast %cst_138 : f32 to vector<8x96xf32>
    %233 = arith.mulf %231, %232 : vector<8x96xf32>
    %cst_139 = arith.constant 5.000000e-01 : f32
    %234 = vector.broadcast %cst_139 : f32 to vector<8x96xf32>
    %235 = arith.addf %233, %234 : vector<8x96xf32>
    %236 = vector.extract_strided_slice %235 {offsets = [0, 0], sizes = [8, 32], strides = [1, 1]} : vector<8x96xf32> to vector<8x32xf32>
    %237 = vector.extract_strided_slice %235 {offsets = [0, 32], sizes = [8, 32], strides = [1, 1]} : vector<8x96xf32> to vector<8x32xf32>
    %238 = vector.extract_strided_slice %235 {offsets = [0, 64], sizes = [8, 32], strides = [1, 1]} : vector<8x96xf32> to vector<8x32xf32>
    %239 = vector.extract_strided_slice %230 {offsets = [0, 96], sizes = [8, 32], strides = [1, 1]} : vector<8x128xf32> to vector<8x32xf32>
    %c0_140 = arith.constant 0 : index
    %c0_141 = arith.constant 0 : index
    %240 = vector.load %arg11[%c0_140, %c0_141] : memref<8x32xf32, #tpu.memory_space<vmem>>, vector<8x32xf32>
    %241 = arith.mulf %237, %240 : vector<8x32xf32>
    %242 = arith.mulf %236, %239 : vector<8x32xf32>
    %243 = arith.addf %241, %242 : vector<8x32xf32>
    %244 = math.tanh %243 : vector<8x32xf32>
    %245 = arith.mulf %238, %244 : vector<8x32xf32>
    %c0_142 = arith.constant 0 : index
    %c0_143 = arith.constant 0 : index
    %246 = vector.load %arg12[%c0_142, %c0_143] : memref<8x32xf32, #tpu.memory_space<vmem>>, vector<8x32xf32>
    %247 = vector.shape_cast %223 : vector<8x1xi1> to vector<8x1xi1>
    %248 = vector.broadcast %247 : vector<8x1xi1> to vector<8x32xi1>
    %249 = arith.select %248, %245, %246 : vector<8x32xi1>, vector<8x32xf32>
    %c0_144 = arith.constant 0 : index
    %c0_145 = arith.constant 0 : index
    %250 = vector.load %arg11[%c0_144, %c0_145] : memref<8x32xf32, #tpu.memory_space<vmem>>, vector<8x32xf32>
    %251 = vector.shape_cast %223 : vector<8x1xi1> to vector<8x1xi1>
    %252 = vector.broadcast %251 : vector<8x1xi1> to vector<8x32xi1>
    %253 = arith.select %252, %243, %250 : vector<8x32xi1>, vector<8x32xf32>
    %c0_146 = arith.constant 0 : index
    %c0_147 = arith.constant 0 : index
    %254 = vector.load %arg11[%c0_146, %c0_147] : memref<8x32xf32, #tpu.memory_space<vmem>>, vector<8x32xf32>
    tpu.vector_store %arg11[%c0_146, %c0_147], %253 {strides = array<i32>} : memref<8x32xf32, #tpu.memory_space<vmem>>, vector<8x32xf32>,
    %c0_148 = arith.constant 0 : index
    %c0_149 = arith.constant 0 : index
    %255 = vector.load %arg12[%c0_148, %c0_149] : memref<8x32xf32, #tpu.memory_space<vmem>>, vector<8x32xf32>
    tpu.vector_store %arg12[%c0_148, %c0_149], %249 {strides = array<i32>} : memref<8x32xf32, #tpu.memory_space<vmem>>, vector<8x32xf32>,
    %256 = vector.extract_strided_slice %249 {offsets = [0, 0], sizes = [4, 32], strides = [1, 1]} : vector<8x32xf32> to vector<4x32xf32>
    %c0_150 = arith.constant 0 : index
    %c0_151 = arith.constant 0 : index
    %257 = vector.load %arg10[%c0_150, %c0_151] : memref<8x96xf32, #tpu.memory_space<vmem>>, vector<4x32xf32>
    tpu.vector_store %arg10[%c0_150, %c0_151], %256 {strides = array<i32>} : memref<8x96xf32, #tpu.memory_space<vmem>>, vector<4x32xf32>,
    %c4_152 = arith.constant 4 : index
    %c32_153 = arith.constant 32 : index
    %258 = vector.load %arg10[%c4_152, %c32_153] : memref<8x96xf32, #tpu.memory_space<vmem>>, vector<4x32xf32>
    tpu.vector_store %arg10[%c4_152, %c32_153], %256 {strides = array<i32>} : memref<8x96xf32, #tpu.memory_space<vmem>>, vector<4x32xf32>,
    %259 = vector.extract_strided_slice %249 {offsets = [4, 0], sizes = [4, 32], strides = [1, 1]} : vector<8x32xf32> to vector<4x32xf32>
    %c4_154 = arith.constant 4 : index
    %c64_155 = arith.constant 64 : index
    %260 = vector.load %arg10[%c4_154, %c64_155] : memref<8x96xf32, #tpu.memory_space<vmem>>, vector<4x32xf32>
    tpu.vector_store %arg10[%c4_154, %c64_155], %259 {strides = array<i32>} : memref<8x96xf32, #tpu.memory_space<vmem>>, vector<4x32xf32>,
    %c6_i32 = arith.constant 6 : i32
    %261 = vector.broadcast %c6_i32 : i32 to vector<8x1xi32>
    %262 = arith.cmpi sle, %6, %261 : vector<8x1xi32>
    %c6_i32_156 = arith.constant 6 : i32
    %263 = vector.broadcast %c6_i32_156 : i32 to vector<8x1xi32>
    %264 = arith.cmpi sgt, %7, %263 : vector<8x1xi32>
    %265 = arith.andi %262, %264 : vector<8x1xi1>
    %c0_157 = arith.constant 0 : index
    %c0_158 = arith.constant 0 : index
    %266 = vector.load %arg10[%c0_157, %c0_158] : memref<8x96xf32, #tpu.memory_space<vmem>>, vector<8x96xf32>
    %267 = arith.truncf %266 : vector<8x96xf32> to vector<8x96xbf16>
    %cst_159 = arith.constant dense<0.000000e+00> : vector<8x128xf32>
    %268 = tpu.matmul %267, %8, %cst_159 {dimension_numbers = #tpu.dot_dimension_numbers<[1], [0], [0], [1], [0, 0, 1, 1], [], []>} : vector<8x96xbf16>, vector<96x128xbf16>, vector<8x128xf32> -> vector<8x128xf32>
    %c6 = arith.constant 6 : index
    %c0_160 = arith.constant 0 : index
    %c0_161 = arith.constant 0 : index
    %269 = vector.load %arg1[%c6, %c0_160, %c0_161] : memref<9x8x128xf32, #tpu.memory_space<vmem>>, vector<1x8x128xf32>
    %270 = vector.shape_cast %269 : vector<1x8x128xf32> to vector<8x128xf32>
    %271 = arith.addf %268, %270 : vector<8x128xf32>
    %272 = math.tanh %271 : vector<8x128xf32>
    %273 = vector.extract_strided_slice %272 {offsets = [0, 0], sizes = [8, 96], strides = [1, 1]} : vector<8x128xf32> to vector<8x96xf32>
    %cst_162 = arith.constant 5.000000e-01 : f32
    %274 = vector.broadcast %cst_162 : f32 to vector<8x96xf32>
    %275 = arith.mulf %273, %274 : vector<8x96xf32>
    %cst_163 = arith.constant 5.000000e-01 : f32
    %276 = vector.broadcast %cst_163 : f32 to vector<8x96xf32>
    %277 = arith.addf %275, %276 : vector<8x96xf32>
    %278 = vector.extract_strided_slice %277 {offsets = [0, 0], sizes = [8, 32], strides = [1, 1]} : vector<8x96xf32> to vector<8x32xf32>
    %279 = vector.extract_strided_slice %277 {offsets = [0, 32], sizes = [8, 32], strides = [1, 1]} : vector<8x96xf32> to vector<8x32xf32>
    %280 = vector.extract_strided_slice %277 {offsets = [0, 64], sizes = [8, 32], strides = [1, 1]} : vector<8x96xf32> to vector<8x32xf32>
    %281 = vector.extract_strided_slice %272 {offsets = [0, 96], sizes = [8, 32], strides = [1, 1]} : vector<8x128xf32> to vector<8x32xf32>
    %c0_164 = arith.constant 0 : index
    %c0_165 = arith.constant 0 : index
    %282 = vector.load %arg11[%c0_164, %c0_165] : memref<8x32xf32, #tpu.memory_space<vmem>>, vector<8x32xf32>
    %283 = arith.mulf %279, %282 : vector<8x32xf32>
    %284 = arith.mulf %278, %281 : vector<8x32xf32>
    %285 = arith.addf %283, %284 : vector<8x32xf32>
    %286 = math.tanh %285 : vector<8x32xf32>
    %287 = arith.mulf %280, %286 : vector<8x32xf32>
    %c0_166 = arith.constant 0 : index
    %c0_167 = arith.constant 0 : index
    %288 = vector.load %arg12[%c0_166, %c0_167] : memref<8x32xf32, #tpu.memory_space<vmem>>, vector<8x32xf32>
    %289 = vector.shape_cast %265 : vector<8x1xi1> to vector<8x1xi1>
    %290 = vector.broadcast %289 : vector<8x1xi1> to vector<8x32xi1>
    %291 = arith.select %290, %287, %288 : vector<8x32xi1>, vector<8x32xf32>
    %c0_168 = arith.constant 0 : index
    %c0_169 = arith.constant 0 : index
    %292 = vector.load %arg11[%c0_168, %c0_169] : memref<8x32xf32, #tpu.memory_space<vmem>>, vector<8x32xf32>
    %293 = vector.shape_cast %265 : vector<8x1xi1> to vector<8x1xi1>
    %294 = vector.broadcast %293 : vector<8x1xi1> to vector<8x32xi1>
    %295 = arith.select %294, %285, %292 : vector<8x32xi1>, vector<8x32xf32>
    %c0_170 = arith.constant 0 : index
    %c0_171 = arith.constant 0 : index
    %296 = vector.load %arg11[%c0_170, %c0_171] : memref<8x32xf32, #tpu.memory_space<vmem>>, vector<8x32xf32>
    tpu.vector_store %arg11[%c0_170, %c0_171], %295 {strides = array<i32>} : memref<8x32xf32, #tpu.memory_space<vmem>>, vector<8x32xf32>,
    %c0_172 = arith.constant 0 : index
    %c0_173 = arith.constant 0 : index
    %297 = vector.load %arg12[%c0_172, %c0_173] : memref<8x32xf32, #tpu.memory_space<vmem>>, vector<8x32xf32>
    tpu.vector_store %arg12[%c0_172, %c0_173], %291 {strides = array<i32>} : memref<8x32xf32, #tpu.memory_space<vmem>>, vector<8x32xf32>,
    %298 = vector.extract_strided_slice %291 {offsets = [0, 0], sizes = [4, 32], strides = [1, 1]} : vector<8x32xf32> to vector<4x32xf32>
    %c0_174 = arith.constant 0 : index
    %c0_175 = arith.constant 0 : index
    %299 = vector.load %arg10[%c0_174, %c0_175] : memref<8x96xf32, #tpu.memory_space<vmem>>, vector<4x32xf32>
    tpu.vector_store %arg10[%c0_174, %c0_175], %298 {strides = array<i32>} : memref<8x96xf32, #tpu.memory_space<vmem>>, vector<4x32xf32>,
    %c4_176 = arith.constant 4 : index
    %c32_177 = arith.constant 32 : index
    %300 = vector.load %arg10[%c4_176, %c32_177] : memref<8x96xf32, #tpu.memory_space<vmem>>, vector<4x32xf32>
    tpu.vector_store %arg10[%c4_176, %c32_177], %298 {strides = array<i32>} : memref<8x96xf32, #tpu.memory_space<vmem>>, vector<4x32xf32>,
    %301 = vector.extract_strided_slice %291 {offsets = [4, 0], sizes = [4, 32], strides = [1, 1]} : vector<8x32xf32> to vector<4x32xf32>
    %c4_178 = arith.constant 4 : index
    %c64_179 = arith.constant 64 : index
    %302 = vector.load %arg10[%c4_178, %c64_179] : memref<8x96xf32, #tpu.memory_space<vmem>>, vector<4x32xf32>
    tpu.vector_store %arg10[%c4_178, %c64_179], %301 {strides = array<i32>} : memref<8x96xf32, #tpu.memory_space<vmem>>, vector<4x32xf32>,
    %c7_i32 = arith.constant 7 : i32
    %303 = vector.broadcast %c7_i32 : i32 to vector<8x1xi32>
    %304 = arith.cmpi sle, %6, %303 : vector<8x1xi32>
    %c7_i32_180 = arith.constant 7 : i32
    %305 = vector.broadcast %c7_i32_180 : i32 to vector<8x1xi32>
    %306 = arith.cmpi sgt, %7, %305 : vector<8x1xi32>
    %307 = arith.andi %304, %306 : vector<8x1xi1>
    %c0_181 = arith.constant 0 : index
    %c0_182 = arith.constant 0 : index
    %308 = vector.load %arg10[%c0_181, %c0_182] : memref<8x96xf32, #tpu.memory_space<vmem>>, vector<8x96xf32>
    %309 = arith.truncf %308 : vector<8x96xf32> to vector<8x96xbf16>
    %cst_183 = arith.constant dense<0.000000e+00> : vector<8x128xf32>
    %310 = tpu.matmul %309, %8, %cst_183 {dimension_numbers = #tpu.dot_dimension_numbers<[1], [0], [0], [1], [0, 0, 1, 1], [], []>} : vector<8x96xbf16>, vector<96x128xbf16>, vector<8x128xf32> -> vector<8x128xf32>
    %c7 = arith.constant 7 : index
    %c0_184 = arith.constant 0 : index
    %c0_185 = arith.constant 0 : index
    %311 = vector.load %arg1[%c7, %c0_184, %c0_185] : memref<9x8x128xf32, #tpu.memory_space<vmem>>, vector<1x8x128xf32>
    %312 = vector.shape_cast %311 : vector<1x8x128xf32> to vector<8x128xf32>
    %313 = arith.addf %310, %312 : vector<8x128xf32>
    %314 = math.tanh %313 : vector<8x128xf32>
    %315 = vector.extract_strided_slice %314 {offsets = [0, 0], sizes = [8, 96], strides = [1, 1]} : vector<8x128xf32> to vector<8x96xf32>
    %cst_186 = arith.constant 5.000000e-01 : f32
    %316 = vector.broadcast %cst_186 : f32 to vector<8x96xf32>
    %317 = arith.mulf %315, %316 : vector<8x96xf32>
    %cst_187 = arith.constant 5.000000e-01 : f32
    %318 = vector.broadcast %cst_187 : f32 to vector<8x96xf32>
    %319 = arith.addf %317, %318 : vector<8x96xf32>
    %320 = vector.extract_strided_slice %319 {offsets = [0, 0], sizes = [8, 32], strides = [1, 1]} : vector<8x96xf32> to vector<8x32xf32>
    %321 = vector.extract_strided_slice %319 {offsets = [0, 32], sizes = [8, 32], strides = [1, 1]} : vector<8x96xf32> to vector<8x32xf32>
    %322 = vector.extract_strided_slice %319 {offsets = [0, 64], sizes = [8, 32], strides = [1, 1]} : vector<8x96xf32> to vector<8x32xf32>
    %323 = vector.extract_strided_slice %314 {offsets = [0, 96], sizes = [8, 32], strides = [1, 1]} : vector<8x128xf32> to vector<8x32xf32>
    %c0_188 = arith.constant 0 : index
    %c0_189 = arith.constant 0 : index
    %324 = vector.load %arg11[%c0_188, %c0_189] : memref<8x32xf32, #tpu.memory_space<vmem>>, vector<8x32xf32>
    %325 = arith.mulf %321, %324 : vector<8x32xf32>
    %326 = arith.mulf %320, %323 : vector<8x32xf32>
    %327 = arith.addf %325, %326 : vector<8x32xf32>
    %328 = math.tanh %327 : vector<8x32xf32>
    %329 = arith.mulf %322, %328 : vector<8x32xf32>
    %c0_190 = arith.constant 0 : index
    %c0_191 = arith.constant 0 : index
    %330 = vector.load %arg12[%c0_190, %c0_191] : memref<8x32xf32, #tpu.memory_space<vmem>>, vector<8x32xf32>
    %331 = vector.shape_cast %307 : vector<8x1xi1> to vector<8x1xi1>
    %332 = vector.broadcast %331 : vector<8x1xi1> to vector<8x32xi1>
    %333 = arith.select %332, %329, %330 : vector<8x32xi1>, vector<8x32xf32>
    %c0_192 = arith.constant 0 : index
    %c0_193 = arith.constant 0 : index
    %334 = vector.load %arg11[%c0_192, %c0_193] : memref<8x32xf32, #tpu.memory_space<vmem>>, vector<8x32xf32>
    %335 = vector.shape_cast %307 : vector<8x1xi1> to vector<8x1xi1>
    %336 = vector.broadcast %335 : vector<8x1xi1> to vector<8x32xi1>
    %337 = arith.select %336, %327, %334 : vector<8x32xi1>, vector<8x32xf32>
    %c0_194 = arith.constant 0 : index
    %c0_195 = arith.constant 0 : index
    %338 = vector.load %arg11[%c0_194, %c0_195] : memref<8x32xf32, #tpu.memory_space<vmem>>, vector<8x32xf32>
    tpu.vector_store %arg11[%c0_194, %c0_195], %337 {strides = array<i32>} : memref<8x32xf32, #tpu.memory_space<vmem>>, vector<8x32xf32>,
    %c0_196 = arith.constant 0 : index
    %c0_197 = arith.constant 0 : index
    %339 = vector.load %arg12[%c0_196, %c0_197] : memref<8x32xf32, #tpu.memory_space<vmem>>, vector<8x32xf32>
    tpu.vector_store %arg12[%c0_196, %c0_197], %333 {strides = array<i32>} : memref<8x32xf32, #tpu.memory_space<vmem>>, vector<8x32xf32>,
    %340 = vector.extract_strided_slice %333 {offsets = [0, 0], sizes = [4, 32], strides = [1, 1]} : vector<8x32xf32> to vector<4x32xf32>
    %c0_198 = arith.constant 0 : index
    %c0_199 = arith.constant 0 : index
    %341 = vector.load %arg10[%c0_198, %c0_199] : memref<8x96xf32, #tpu.memory_space<vmem>>, vector<4x32xf32>
    tpu.vector_store %arg10[%c0_198, %c0_199], %340 {strides = array<i32>} : memref<8x96xf32, #tpu.memory_space<vmem>>, vector<4x32xf32>,
    %c4_200 = arith.constant 4 : index
    %c32_201 = arith.constant 32 : index
    %342 = vector.load %arg10[%c4_200, %c32_201] : memref<8x96xf32, #tpu.memory_space<vmem>>, vector<4x32xf32>
    tpu.vector_store %arg10[%c4_200, %c32_201], %340 {strides = array<i32>} : memref<8x96xf32, #tpu.memory_space<vmem>>, vector<4x32xf32>,
    %343 = vector.extract_strided_slice %333 {offsets = [4, 0], sizes = [4, 32], strides = [1, 1]} : vector<8x32xf32> to vector<4x32xf32>
    %c4_202 = arith.constant 4 : index
    %c64_203 = arith.constant 64 : index
    %344 = vector.load %arg10[%c4_202, %c64_203] : memref<8x96xf32, #tpu.memory_space<vmem>>, vector<4x32xf32>
    tpu.vector_store %arg10[%c4_202, %c64_203], %343 {strides = array<i32>} : memref<8x96xf32, #tpu.memory_space<vmem>>, vector<4x32xf32>,
    %c8_i32 = arith.constant 8 : i32
    %345 = vector.broadcast %c8_i32 : i32 to vector<8x1xi32>
    %346 = arith.cmpi sle, %6, %345 : vector<8x1xi32>
    %c8_i32_204 = arith.constant 8 : i32
    %347 = vector.broadcast %c8_i32_204 : i32 to vector<8x1xi32>
    %348 = arith.cmpi sgt, %7, %347 : vector<8x1xi32>
    %349 = arith.andi %346, %348 : vector<8x1xi1>
    %c0_205 = arith.constant 0 : index
    %c0_206 = arith.constant 0 : index
    %350 = vector.load %arg10[%c0_205, %c0_206] : memref<8x96xf32, #tpu.memory_space<vmem>>, vector<8x96xf32>
    %351 = arith.truncf %350 : vector<8x96xf32> to vector<8x96xbf16>
    %cst_207 = arith.constant dense<0.000000e+00> : vector<8x128xf32>
    %352 = tpu.matmul %351, %8, %cst_207 {dimension_numbers = #tpu.dot_dimension_numbers<[1], [0], [0], [1], [0, 0, 1, 1], [], []>} : vector<8x96xbf16>, vector<96x128xbf16>, vector<8x128xf32> -> vector<8x128xf32>
    %c8 = arith.constant 8 : index
    %c0_208 = arith.constant 0 : index
    %c0_209 = arith.constant 0 : index
    %353 = vector.load %arg1[%c8, %c0_208, %c0_209] : memref<9x8x128xf32, #tpu.memory_space<vmem>>, vector<1x8x128xf32>
    %354 = vector.shape_cast %353 : vector<1x8x128xf32> to vector<8x128xf32>
    %355 = arith.addf %352, %354 : vector<8x128xf32>
    %356 = math.tanh %355 : vector<8x128xf32>
    %357 = vector.extract_strided_slice %356 {offsets = [0, 0], sizes = [8, 96], strides = [1, 1]} : vector<8x128xf32> to vector<8x96xf32>
    %cst_210 = arith.constant 5.000000e-01 : f32
    %358 = vector.broadcast %cst_210 : f32 to vector<8x96xf32>
    %359 = arith.mulf %357, %358 : vector<8x96xf32>
    %cst_211 = arith.constant 5.000000e-01 : f32
    %360 = vector.broadcast %cst_211 : f32 to vector<8x96xf32>
    %361 = arith.addf %359, %360 : vector<8x96xf32>
    %362 = vector.extract_strided_slice %361 {offsets = [0, 0], sizes = [8, 32], strides = [1, 1]} : vector<8x96xf32> to vector<8x32xf32>
    %363 = vector.extract_strided_slice %361 {offsets = [0, 32], sizes = [8, 32], strides = [1, 1]} : vector<8x96xf32> to vector<8x32xf32>
    %364 = vector.extract_strided_slice %361 {offsets = [0, 64], sizes = [8, 32], strides = [1, 1]} : vector<8x96xf32> to vector<8x32xf32>
    %365 = vector.extract_strided_slice %356 {offsets = [0, 96], sizes = [8, 32], strides = [1, 1]} : vector<8x128xf32> to vector<8x32xf32>
    %c0_212 = arith.constant 0 : index
    %c0_213 = arith.constant 0 : index
    %366 = vector.load %arg11[%c0_212, %c0_213] : memref<8x32xf32, #tpu.memory_space<vmem>>, vector<8x32xf32>
    %367 = arith.mulf %363, %366 : vector<8x32xf32>
    %368 = arith.mulf %362, %365 : vector<8x32xf32>
    %369 = arith.addf %367, %368 : vector<8x32xf32>
    %370 = math.tanh %369 : vector<8x32xf32>
    %371 = arith.mulf %364, %370 : vector<8x32xf32>
    %c0_214 = arith.constant 0 : index
    %c0_215 = arith.constant 0 : index
    %372 = vector.load %arg12[%c0_214, %c0_215] : memref<8x32xf32, #tpu.memory_space<vmem>>, vector<8x32xf32>
    %373 = vector.shape_cast %349 : vector<8x1xi1> to vector<8x1xi1>
    %374 = vector.broadcast %373 : vector<8x1xi1> to vector<8x32xi1>
    %375 = arith.select %374, %371, %372 : vector<8x32xi1>, vector<8x32xf32>
    %c0_216 = arith.constant 0 : index
    %c0_217 = arith.constant 0 : index
    %376 = vector.load %arg11[%c0_216, %c0_217] : memref<8x32xf32, #tpu.memory_space<vmem>>, vector<8x32xf32>
    %377 = vector.shape_cast %349 : vector<8x1xi1> to vector<8x1xi1>
    %378 = vector.broadcast %377 : vector<8x1xi1> to vector<8x32xi1>
    %379 = arith.select %378, %369, %376 : vector<8x32xi1>, vector<8x32xf32>
    %c0_218 = arith.constant 0 : index
    %c0_219 = arith.constant 0 : index
    %380 = vector.load %arg11[%c0_218, %c0_219] : memref<8x32xf32, #tpu.memory_space<vmem>>, vector<8x32xf32>
    tpu.vector_store %arg11[%c0_218, %c0_219], %379 {strides = array<i32>} : memref<8x32xf32, #tpu.memory_space<vmem>>, vector<8x32xf32>,
    %c0_220 = arith.constant 0 : index
    %c0_221 = arith.constant 0 : index
    %381 = vector.load %arg12[%c0_220, %c0_221] : memref<8x32xf32, #tpu.memory_space<vmem>>, vector<8x32xf32>
    tpu.vector_store %arg12[%c0_220, %c0_221], %375 {strides = array<i32>} : memref<8x32xf32, #tpu.memory_space<vmem>>, vector<8x32xf32>,
    %382 = vector.extract_strided_slice %375 {offsets = [0, 0], sizes = [4, 32], strides = [1, 1]} : vector<8x32xf32> to vector<4x32xf32>
    %c0_222 = arith.constant 0 : index
    %c0_223 = arith.constant 0 : index
    %383 = vector.load %arg10[%c0_222, %c0_223] : memref<8x96xf32, #tpu.memory_space<vmem>>, vector<4x32xf32>
    tpu.vector_store %arg10[%c0_222, %c0_223], %382 {strides = array<i32>} : memref<8x96xf32, #tpu.memory_space<vmem>>, vector<4x32xf32>,
    %c4_224 = arith.constant 4 : index
    %c32_225 = arith.constant 32 : index
    %384 = vector.load %arg10[%c4_224, %c32_225] : memref<8x96xf32, #tpu.memory_space<vmem>>, vector<4x32xf32>
    tpu.vector_store %arg10[%c4_224, %c32_225], %382 {strides = array<i32>} : memref<8x96xf32, #tpu.memory_space<vmem>>, vector<4x32xf32>,
    %385 = vector.extract_strided_slice %375 {offsets = [4, 0], sizes = [4, 32], strides = [1, 1]} : vector<8x32xf32> to vector<4x32xf32>
    %c4_226 = arith.constant 4 : index
    %c64_227 = arith.constant 64 : index
    %386 = vector.load %arg10[%c4_226, %c64_227] : memref<8x96xf32, #tpu.memory_space<vmem>>, vector<4x32xf32>
    tpu.vector_store %arg10[%c4_226, %c64_227], %385 {strides = array<i32>} : memref<8x96xf32, #tpu.memory_space<vmem>>, vector<4x32xf32>,
    %c0_228 = arith.constant 0 : index
    %c0_229 = arith.constant 0 : index
    %387 = vector.load %arg12[%c0_228, %c0_229] : memref<8x32xf32, #tpu.memory_space<vmem>>, vector<8x32xf32>
    %388 = tpu.iota {dimensions = array<i32: 0>} : vector<8x1xi32>
    %c4_i32_230 = arith.constant 4 : i32
    %389 = vector.broadcast %c4_i32_230 : i32 to vector<8x1xi32>
    %390 = arith.cmpi sge, %388, %389 : vector<8x1xi32>
    %c8_i32_231 = arith.constant 8 : i32
    %391 = vector.broadcast %c8_i32_231 : i32 to vector<8x1xi32>
    %392 = arith.cmpi slt, %388, %391 : vector<8x1xi32>
    %393 = arith.andi %390, %392 : vector<8x1xi1>
    %394 = arith.extui %393 : vector<8x1xi1> to vector<8x1xi32>
    %395 = arith.sitofp %394 : vector<8x1xi32> to vector<8x1xf32>
    %396 = vector.broadcast %395 : vector<8x1xf32> to vector<8x32xf32>
    %397 = arith.mulf %387, %396 : vector<8x32xf32>
    %cst_232 = arith.constant dense<0.000000e+00> : vector<32xf32>
    %398 = vector.multi_reduction <add>, %397, %cst_232 [0] : vector<8x32xf32> to vector<32xf32>
    %399 = vector.shape_cast %398 : vector<32xf32> to vector<1x32xf32>
    %cst_233 = arith.constant 2.500000e-01 : f32
    %400 = vector.broadcast %cst_233 : f32 to vector<1x32xf32>
    %401 = arith.mulf %399, %400 : vector<1x32xf32>
    %402 = vector.broadcast %401 : vector<1x32xf32> to vector<8x32xf32>
    %403 = arith.subf %387, %402 : vector<8x32xf32>
    %404 = arith.mulf %403, %403 : vector<8x32xf32>
    %405 = vector.broadcast %395 : vector<8x1xf32> to vector<8x32xf32>
    %406 = arith.mulf %404, %405 : vector<8x32xf32>
    %cst_234 = arith.constant dense<0.000000e+00> : vector<32xf32>
    %407 = vector.multi_reduction <add>, %406, %cst_234 [0] : vector<8x32xf32> to vector<32xf32>
    %408 = vector.shape_cast %407 : vector<32xf32> to vector<1x32xf32>
    %cst_235 = arith.constant 2.500000e-01 : f32
    %409 = vector.broadcast %cst_235 : f32 to vector<1x32xf32>
    %410 = arith.mulf %408, %409 : vector<1x32xf32>
    %cst_236 = arith.constant 9.99999974E-6 : f32
    %411 = vector.broadcast %cst_236 : f32 to vector<1x32xf32>
    %412 = arith.addf %410, %411 : vector<1x32xf32>
    %413 = math.rsqrt %412 : vector<1x32xf32>
    %414 = vector.broadcast %413 : vector<1x32xf32> to vector<8x32xf32>
    %415 = arith.mulf %403, %414 : vector<8x32xf32>
    %c0_237 = arith.constant 0 : index
    %c0_238 = arith.constant 0 : index
    %416 = vector.load %arg5[%c0_237, %c0_238] : memref<1x32xf32, #tpu.memory_space<vmem>>, vector<1x32xf32>
    %417 = vector.broadcast %416 : vector<1x32xf32> to vector<8x32xf32>
    %418 = arith.mulf %415, %417 : vector<8x32xf32>
    %c0_239 = arith.constant 0 : index
    %c0_240 = arith.constant 0 : index
    %419 = vector.load %arg6[%c0_239, %c0_240] : memref<1x32xf32, #tpu.memory_space<vmem>>, vector<1x32xf32>
    %420 = vector.broadcast %419 : vector<1x32xf32> to vector<8x32xf32>
    %421 = arith.addf %418, %420 : vector<8x32xf32>
    %422 = arith.truncf %421 : vector<8x32xf32> to vector<8x32xbf16>
    %c0_241 = arith.constant 0 : index
    %c0_242 = arith.constant 0 : index
    %423 = vector.load %arg7[%c0_241, %c0_242] : memref<32x128xbf16, #tpu.memory_space<vmem>>, vector<32x128xbf16>
    %cst_243 = arith.constant dense<0.000000e+00> : vector<8x128xf32>
    %424 = tpu.matmul %422, %423, %cst_243 {dimension_numbers = #tpu.dot_dimension_numbers<[1], [0], [0], [1], [0, 0, 1, 1], [], []>} : vector<8x32xbf16>, vector<32x128xbf16>, vector<8x128xf32> -> vector<8x128xf32>
    %c0_244 = arith.constant 0 : index
    %c0_245 = arith.constant 0 : index
    %425 = vector.load %arg8[%c0_244, %c0_245] : memref<1x128xf32, #tpu.memory_space<vmem>>, vector<1x128xf32>
    %426 = vector.broadcast %425 : vector<1x128xf32> to vector<8x128xf32>
    %427 = arith.addf %424, %426 : vector<8x128xf32>
    %cst_246 = arith.constant dense<0xFF800000> : vector<8xf32>
    %428 = vector.multi_reduction <maximumf>, %427, %cst_246 [1] : vector<8x128xf32> to vector<8xf32>
    %429 = vector.shape_cast %428 : vector<8xf32> to vector<8x1xf32>
    %430 = vector.broadcast %429 : vector<8x1xf32> to vector<8x128xf32>
    %431 = arith.subf %427, %430 : vector<8x128xf32>
    %432 = math.exp %431 : vector<8x128xf32>
    %cst_247 = arith.constant dense<0.000000e+00> : vector<8xf32>
    %433 = vector.multi_reduction <add>, %432, %cst_247 [1] : vector<8x128xf32> to vector<8xf32>
    %434 = vector.shape_cast %433 : vector<8xf32> to vector<8x1xf32>
    %435 = tpu.reciprocal %434 {approx = true} : vector<8x1xf32> -> vector<8x1xf32>
    %436 = vector.broadcast %435 : vector<8x1xf32> to vector<8x128xf32>
    %437 = arith.mulf %432, %436 : vector<8x128xf32>
    %c0_248 = arith.constant 0 : index
    %c0_249 = arith.constant 0 : index
    %438 = vector.load %arg9[%c0_248, %c0_249] : memref<8x128xf32, #tpu.memory_space<vmem>>, vector<8x128xf32>
    tpu.vector_store %arg9[%c0_248, %c0_249], %437 {strides = array<i32>} : memref<8x128xf32, #tpu.memory_space<vmem>>, vector<8x128xf32>,
    return
  }
  func.func @transform_0(%arg0: i32) -> (i32, i32, i32) {
    %c0_i32 = arith.constant 0 : i32
    %c0_i32_0 = arith.constant 0 : i32
    %c0_i32_1 = arith.constant 0 : i32
    %c0_i32_2 = arith.constant 0 : i32
    return %c0_i32, %c0_i32_0, %c0_i32_1 : i32, i32, i32
  }
  func.func @transform_1(%arg0: i32) -> (i32, i32) {
    %c0_i32 = arith.constant 0 : i32
    %c0_i32_0 = arith.constant 0 : i32
    %c0_i32_1 = arith.constant 0 : i32
    return %c0_i32, %c0_i32_0 : i32, i32
  }
  func.func @transform_2(%arg0: i32) -> (i32, i32) {
    %c0_i32 = arith.constant 0 : i32
    %c0_i32_0 = arith.constant 0 : i32
    %c0_i32_1 = arith.constant 0 : i32
    return %c0_i32, %c0_i32_0 : i32, i32
  }
  func.func @transform_3(%arg0: i32) -> (i32, i32) {
    %c0_i32 = arith.constant 0 : i32
    %c0_i32_0 = arith.constant 0 : i32
    %c0_i32_1 = arith.constant 0 : i32
    return %c0_i32, %c0_i32_0 : i32, i32
  }
  func.func @transform_4(%arg0: i32) -> (i32, i32) {
    %c0_i32 = arith.constant 0 : i32
    %c0_i32_0 = arith.constant 0 : i32
    %c0_i32_1 = arith.constant 0 : i32
    return %c0_i32, %c0_i32_0 : i32, i32
  }
  func.func @transform_5(%arg0: i32) -> (i32, i32) {
    %c0_i32 = arith.constant 0 : i32
    %c0_i32_0 = arith.constant 0 : i32
    %c0_i32_1 = arith.constant 0 : i32
    return %c0_i32, %c0_i32_0 : i32, i32
  }
  func.func @transform_6(%arg0: i32) -> (i32, i32) {
    %c0_i32 = arith.constant 0 : i32
    %c0_i32_0 = arith.constant 0 : i32
    %c0_i32_1 = arith.constant 0 : i32
    return %c0_i32, %c0_i32_0 : i32, i32
  }
  func.func @transform_7(%arg0: i32) -> (i32, i32) {
    %c0_i32 = arith.constant 0 : i32
    %c0_i32_0 = arith.constant 0 : i32
    %c0_i32_1 = arith.constant 0 : i32
    return %c0_i32, %c0_i32_0 : i32, i32
  }
  func.func @transform_8(%arg0: i32) -> (i32, i32) {
    %c0_i32 = arith.constant 0 : i32
    %c0_i32_0 = arith.constant 0 : i32
    %c0_i32_1 = arith.constant 0 : i32
    return %c0_i32, %c0_i32_0 : i32, i32
  }
}

</mosaic_0001>

<bundles_post_ra>
// kernel: tpu_custom_call.1
= control target key start
LH: loop header
LB: loop body
LE: loop exit
PB: predicated region body
PF: predicated region fallthrough
CT: control target
= control target key end

     0   :  { %13 = vsyncpa [#allocation6], 0  ;;  %s2001_s0 = inlined_call_operand.hbm [shape: f32[9,8,128], index: 0, kind: input, shape index: {}]   ;;  %s2002_s1 = inlined_call_operand.vmem [shape: s32[8,1], index: 1, kind: input, shape index: {}]   ;;  %s2003_s2 = inlined_call_operand.vmem [shape: s32[8,1], index: 2, kind: input, shape index: {}]   ;;  %s2004_s3 = inlined_call_operand.hbm [shape: bf16[96,128], index: 3, kind: input, shape index: {}]   ;;  %s2005_s4 = inlined_call_operand.vmem [shape: f32[1,32], index: 4, kind: input, shape index: {}]   ;;  %s2006_s5 = inlined_call_operand.vmem [shape: f32[1,32], index: 5, kind: input, shape index: {}]   ;;  %s2007_s6 = inlined_call_operand.vmem [shape: bf16[32,128], index: 6, kind: input, shape index: {}]   ;;  %s2008_s7 = inlined_call_operand.vmem [shape: f32[1,128], index: 7, kind: input, shape index: {}]   ;;  %s2009_s8 = inlined_call_operand.hbm [shape: f32[8,128], index: 8, kind: output, shape index: {}]  }
   0x1   :  { %14 = vsyncpa [#allocation9], 0 }
   0x2   :  { %15 = vsyncpa [#allocation7], 0  ;;  %s1559_s27 = smov [#allocation5]   ;;  %s1487_s9 = scalar_lea.hbm %s2001_s0, 1152 }
   0x3   :  { %s21_s28 = sshll.u32 %s1559_s27, 4  ;;  %p1488_p0 = scmp.ne.s32.totalorder %s2001_s0, %s1487_s9  ;;  %s22_s28 = int_to_ptr.vmem [resolvable:$true] %s21_s28 }
   0x4   :  { %p1491_p1 = scmp.lt.u32.totalorder %s1487_s9, %s2001_s0 }
   0x6   :  { %p1493_p2 = pnand %p1491_p1, %p1488_p0 }
   0x8   :  { %1496 = shalt.err (!%p1493_p2)
}
   0x9   :  { %s1497_s14 = scalar_lea.vmem %s22_s28, 1152  ;;  %p1502_p4 = scmp.lt.s32.totalorder %s22_s28, %s22_s28 }
   0xa   :  { %p1498_p3 = scmp.ne.s32.totalorder %s22_s28, %s1497_s14  ;;  %p1503_p5 = scmp.lt.s32.totalorder %s1497_s14, %s1497_s14 }
   0xc   :  { %p1504_p6 = por %p1503_p5, %p1502_p4 }
   0xe   :  { %p1505_p7 = pnand %p1504_p6, %p1498_p3 }
  0x10   :  { %1508 = shalt.err (!%p1505_p7)
}
  0x11   :  { %s1560_s15 = smov 128   ;;  %s1561_s16 = smov 8  }
  0x12   :  { %27 = dma.hbm_to_vmem [thread:$0]  %s2001_s0, 1152, %s22_s28, [#allocation6], %s1560_s15, %s1560_s15, %s1561_s16  }
  0x13   :  { %s1562_s19 = smov [#allocation8]   ;;  %s1509_s23 = scalar_lea.hbm %s2004_s3, 768 }
  0x14   :  { %s37_s20 = sshll.u32 %s1562_s19, 4  ;;  %p1510_p8 = scmp.ne.s32.totalorder %s2004_s3, %s1509_s23  ;;  %s38_s20 = int_to_ptr.vmem [resolvable:$true] %s37_s20 }
  0x15   :  { %p1513_p9 = scmp.lt.u32.totalorder %s1509_s23, %s2004_s3 }
  0x17   :  { %p1515_p10 = pnand %p1513_p9, %p1510_p8 }
  0x19   :  { %1518 = shalt.err (!%p1515_p10)
}
  0x1a   :  { %s1519_s29 = scalar_lea.vmem %s38_s20, 768  ;;  %p1524_p12 = scmp.lt.s32.totalorder %s38_s20, %s38_s20 }
  0x1b   :  { %p1520_p11 = scmp.ne.s32.totalorder %s38_s20, %s1519_s29  ;;  %p1525_p13 = scmp.lt.s32.totalorder %s1519_s29, %s1519_s29 }
  0x1d   :  { %p1526_p0 = por %p1525_p13, %p1524_p12 }
  0x1f   :  { %p1527_p1 = pnand %p1526_p0, %p1520_p11 }
  0x21   :  { %1530 = shalt.err (!%p1527_p1)
}
  0x22   :  { %s1563_s0 = smov 64   ;;  %s1564_s28 = smov 4  }
  0x23   :  { %43 = dma.hbm_to_vmem [thread:$0]  %s2004_s3, 768, %s38_s20, [#allocation9], %s1563_s0, %s1563_s0, %s1564_s28  }
  0x24   :  { %1553 = dma.done.wait [#allocation6], 1152  }
  0x25   :  { %1554 = vsyncadd [#allocation6], 4294966144 }
  0x26   :  { %1555 = dma.done.wait [#allocation9], 768  }
  0x27   :  { %1556 = vsyncadd [#allocation9], 4294966528  ;;  %vm59_vm0 = vcmask 785408   ;;  %v1565_v0 = vmov 0.0   ;;  %vm1566_vm1 = vmmov 0   ;;  %v1650_v1 = vld [vmem:[#allocation8] sm:$0xff]  }
  0x28   :  { %1271 = vmatprep.subr.bf16.mxu0 %v1565_v0  ;;  %1283 = vmatprep.mubr.msk.bf16.mxu0 %vm1566_vm1, %v1565_v0  ;;  %60 = vst.msk [vmem:[#allocation2] sm:$0xff] %vm59_vm0, %v1565_v0  ;;  %v1653_v2 = vld [vmem:[#allocation8 + $0x8] sm:$0xff]   ;;  %v1659_v3 = vld [vmem:[#allocation8 + $0x10] sm:$0xff]   ;;  %v1665_v4 = vld [vmem:[#allocation8 + $0x18] sm:$0xff]   ;;  %vm61_vm2 = vcmask 261120   ;;  %v1567_v15 = vmov 0  }
  0x29   :  { %1287 = vmatprep.subr.bf16.mxu1 %v1565_v0  ;;  %1299 = vmatprep.mubr.msk.bf16.mxu1 %vm1566_vm1, %v1565_v0  ;;  %v1671_v5 = vld [vmem:[#allocation8 + $0x20] sm:$0xff]   ;;  %v1677_v6 = vld [vmem:[#allocation8 + $0x28] sm:$0xff]   ;;  %62 = vst.msk [vmem:[#allocation3] sm:$0xff] %vm61_vm2, %v1565_v0  ;;  %63 = vst.msk [vmem:[#allocation4] sm:$0xff] %vm61_vm2, %v1565_v0  ;;  %s1568_s3 = smov 32   ;;  %vm210_vm7 = vcmask 257024  }
  0x2a   :  { %1272 = vmatpush3.bf16.msra.mxu0 %v1650_v1  ;;  %1288 = vmatpush3.bf16.msra.mxu1 %v1650_v1  ;;  %v83_v9 = vld [vmem:[#allocation5] sm:$0xff]  ;;  %v1712_v19 = vld [vmem:[%s2002_s1] sm:$0xff]  ;;  %s1569_s1 = smov 96   ;;  %vm215_vm8 = vcmask 519424   ;;  %vm217_vm9 = vcmask 785924  }
  0x2b   :  { %1273 = vmatprep.subr.bf16.mxu0 %v1565_v0  ;;  %1289 = vmatprep.subr.bf16.mxu1 %v1565_v0  ;;  %v1717_v20 = vld [vmem:[%s2003_s2] sm:$0xff]  ;;  %vm78_vm3 = vcmp.le.s32.totalorder %v1712_v19, 0  ;;  %vm219_vm10 = vcmp.le.s32.totalorder %v1712_v19, 1  ;;  %vm322_vm14 = vcmp.le.s32.totalorder %v1712_v19, 2 }
  0x2c   :  { %1435 = vset.pattern.permute.xlu1 %v1567_v15  ;;  %1436 = vset.pattern.permute.xlu0 %v1567_v15  ;;  %vm79_vm4 = vcmp.gt.s32.totalorder %v1717_v20, 0  ;;  %vm220_vm11 = vcmp.gt.s32.totalorder %v1717_v20, 1  ;;  %v225_v44 = vld [vmem:[#allocation5 + $0x8] sm:$0xff]  ;;  %vm323_vm15 = vcmp.gt.s32.totalorder %v1717_v20, 2 }
  0x2d   :  { %vm80_vm5 = vmand %vm78_vm3, %vm79_vm4 }
  0x2e   :  { %1274 = vmatpush3.bf16.msra.mxu0 %v1653_v2  ;;  %1290 = vmatpush3.bf16.msra.mxu1 %v1653_v2  ;;  %v189_v24 = vsel %vm80_vm5, 1, %v1567_v15  ;;  %vm221_vm12 = vmand %vm219_vm10, %vm220_vm11  ;;  %vm425_vm5 = vcmp.le.s32.totalorder %v1712_v19, 3 }
  0x2f   :  { %1275 = vmatprep.subr.bf16.mxu0 %v1565_v0  ;;  %1291 = vmatprep.subr.bf16.mxu1 %v1565_v0  ;;  %v81_v7 = vld [vmem:[#allocation2] sm:$0xff]  ;;  %v295_v43 = vsel %vm221_vm12, 1, %v1567_v15  ;;  %vm324_vm3 = vmand %vm322_vm14, %vm323_vm15  ;;  %vm528_vm12 = vcmp.le.s32.totalorder %v1712_v19, 4 }
  0x30   :  { %v82_v8 = vpack.c.bf16 %v81_v7, %v81_v7  ;;  %v166_v17 = vld [vmem:[#allocation3] sm:$0xff]  ;;  %v188_v25 = vld [vmem:[#allocation4] sm:$0xff] }
  0x32   :  { %1276 = vmatpush3.bf16.msra.mxu0 %v1659_v3  ;;  %1292 = vmatpush3.bf16.msra.mxu1 %v1659_v3 }
  0x33   :  { %1277 = vmatprep.subr.bf16.mxu0 %v1565_v0  ;;  %1293 = vmatprep.subr.bf16.mxu1 %v1565_v0 }
  0x36   :  { %1278 = vmatpush3.bf16.msra.mxu0 %v1665_v4  ;;  %1294 = vmatpush3.bf16.msra.mxu1 %v1665_v4 }
  0x37   :  { %1279 = vmatprep.subr.bf16.mxu0 %v1565_v0  ;;  %1295 = vmatprep.subr.bf16.mxu1 %v1565_v0 }
  0x3a   :  { %1280 = vmatpush3.bf16.msra.mxu0 %v1671_v5  ;;  %1296 = vmatpush3.bf16.msra.mxu1 %v1671_v5 }
  0x3b   :  { %1281 = vmatprep.subr.bf16.mxu0 %v1565_v0  ;;  %1297 = vmatprep.subr.bf16.mxu1 %v1565_v0 }
  0x3e   :  { %1282 = vmatpush3.bf16.msra.mxu0 %v1677_v6  ;;  %1298 = vmatpush3.bf16.msra.mxu1 %v1677_v6 }
  0x3f   :  { %1303 = vmatprep.subr.bf16.mxu0 %v1565_v0  ;;  %1319 = vmatprep.subr.bf16.mxu1 %v1565_v0 }
  0x41   :  { %1284 = vmatmul.mubr.msk.bf16.vlgmr.msra.gmra.mrb[0].mxu0 %vm59_vm0, %v82_v8 }
  0x42   :  { %1304 = vmatpush3.bf16.msra.mxu0 %v1650_v1  ;;  %1315 = vmatprep.mubr.msk.bf16.mxu0 %vm1566_vm1, %v1565_v0 }
  0x43   :  { %1305 = vmatprep.subr.bf16.mxu0 %v1565_v0 }
  0x46   :  { %1306 = vmatpush3.bf16.msra.mxu0 %v1653_v2 }
  0x47   :  { %1307 = vmatprep.subr.bf16.mxu0 %v1565_v0 }
  0x4a   :  { %1308 = vmatpush3.bf16.msra.mxu0 %v1659_v3 }
  0x4b   :  { %1309 = vmatprep.subr.bf16.mxu0 %v1565_v0 }
  0x4e   :  { %1310 = vmatpush3.bf16.msra.mxu0 %v1665_v4 }
  0x4f   :  { %1311 = vmatprep.subr.bf16.mxu0 %v1565_v0 }
  0x52   :  { %1312 = vmatpush3.bf16.msra.mxu0 %v1671_v5 }
  0x53   :  { %1313 = vmatprep.subr.bf16.mxu0 %v1565_v0 }
  0x56   :  { %1314 = vmatpush3.bf16.msra.mxu0 %v1677_v6 }
  0x57   :  { %1335 = vmatprep.subr.bf16.mxu0 %v1565_v0 }
 0x114   :  { %v157_v10 = vpop.f32.mrb[0].mxu0 }
 0x115   :  { %v158_v11 = vadd.f32 %v157_v10, %v83_v9  ;;  %v1285_v12 = vpop.f32.mrb[1].mxu0 }
 0x116   :  { %v160_v13 = vpop.f32.mrb[2].mxu0 }
 0x117   :  { %1445 = vtanh.f32 %v158_v11  ;;  %v1286_v14 = vpop.f32.mrb[3].mxu0 }
 0x121   :  { %v1446_v16 = vpop.eup %1445 }
 0x122   :  { %173 = vrot.lane.b32.xlu0 %v1446_v16, %s1568_s3  ;;  %v164_v18 = vmul.f32 0.5, %v1446_v16 }
 0x124   :  { %v165_v21 = vadd.f32 0.5, %v164_v18 }
 0x126   :  { %168 = vrot.lane.b32.xlu0 %v166_v17, %s1568_s3  ;;  %v398_v17 = vsel %vm324_vm3, 1, %v1567_v15  ;;  %vm631_vm3 = vcmp.le.s32.totalorder %v1712_v19, 5 }
 0x194   :  { %v174_v22 = vpop.permute.xlu0 %173 }
 0x195   :  { %v176_v23 = vmul.f32 %v174_v22, %v165_v21 }
 0x197   :  { %178 = vrot.lane.b32.xlu1 %v176_v23, %s1568_s3 }
 0x198   :  { %v169_v26 = vpop.permute.xlu0 %168 }
 0x199   :  { %v171_v27 = vmul.f32 %v169_v26, %v165_v21 }
 0x19b   :  { %191 = vperm.xlu1 %1435, %v189_v24  }
 0x19f   :  { %195 = vrot.lane.b32.xlu1 %v188_v25, %s1563_s0 }
 0x209   :  { %v179_v28 = vpop.permute.xlu1 %178 }
 0x20a   :  { %v181_v29 = vadd.f32 %v179_v28, %v171_v27 }
 0x20c   :  { %1447 = vtanh.f32 %v181_v29 }
 0x216   :  { %v1448_v30 = vpop.eup %1447 }
 0x217   :  { %184 = vrot.lane.b32.xlu0 %v1448_v30, %s1568_s3 }
 0x21a   :  { %v192_v31 = vpop.permute.xlu1 %191 }
 0x21b   :  { %vm193_vm6 = vcmp.eq.s32.totalorder %v192_v31, 1 }
 0x21c   :  { %v199_v36 = vsel %vm193_vm6, %v181_v29, %v169_v26 }
 0x21e   :  { %v196_v33 = vpop.permute.xlu1 %195 }
 0x289   :  { %v185_v32 = vpop.permute.xlu0 %184 }
 0x28a   :  { %v187_v34 = vmul.f32 %v185_v32, %v165_v21  ;;  %v328_v21 = vld [vmem:[#allocation5 + $0x10] sm:$0xff] }
 0x28c   :  { %v198_v35 = vsel %vm193_vm6, %v187_v34, %v196_v33  ;;  %vm426_vm6 = vcmp.gt.s32.totalorder %v1717_v20, 3 }
 0x28d   :  { %206 = vrot.lane.b32.xlu1 %v198_v35, %s1563_s0  ;;  %212 = vrot.lane.b32.xlu0 %v198_v35, %s1569_s1  ;;  %vm427_vm10 = vmand %vm425_vm5, %vm426_vm6 }
 0x291   :  { %201 = vrot.lane.b32.xlu0 %v199_v36, %s1569_s1 }
 0x2ff   :  { %v207_v37 = vpop.permute.xlu1 %206  ;;  %v213_v38 = vpop.permute.xlu0 %212 }
 0x300   :  { %209 = vst.msk [vmem:[#allocation4] sm:$0xff] %vm61_vm2, %v207_v37 }
 0x301   :  { %211 = vst.msk [vmem:[#allocation2] sm:$0xf] %vm210_vm7, %v207_v37 }
 0x302   :  { %216 = vst.msk [vmem:[#allocation2 + $0x4] sm:$0xf] %vm215_vm8, %v213_v38 }
 0x303   :  { %218 = vst.msk [vmem:[#allocation2] sm:$0xf0] %vm217_vm9, %v198_v35  ;;  %v202_v39 = vpop.permute.xlu0 %201 }
 0x304   :  { %204 = vst.msk [vmem:[#allocation3] sm:$0xff] %vm61_vm2, %v202_v39 }
 0x307   :  { %v294_v60 = vld [vmem:[#allocation4] sm:$0xff] }
 0x30a   :  { %v222_v40 = vld [vmem:[#allocation2] sm:$0xff] }
 0x30b   :  { %v223_v41 = vpack.c.bf16 %v222_v40, %v222_v40  ;;  %v272_v42 = vld [vmem:[#allocation3] sm:$0xff] }
 0x30c   :  { %274 = vrot.lane.b32.xlu0 %v272_v42, %s1568_s3 }
 0x30d   :  { %1300 = vmatmul.mubr.msk.bf16.vlgmr.msra.gmra.mrb[0].mxu1 %vm59_vm0, %v223_v41 }
 0x30e   :  { %1320 = vmatpush3.bf16.msra.mxu1 %v1650_v1  ;;  %1331 = vmatprep.mubr.msk.bf16.mxu1 %vm1566_vm1, %v1565_v0 }
 0x30f   :  { %1321 = vmatprep.subr.bf16.mxu1 %v1565_v0 }
 0x310   :  { %297 = vperm.xlu0 %1436, %v295_v43  }
 0x312   :  { %1322 = vmatpush3.bf16.msra.mxu1 %v1653_v2 }
 0x313   :  { %1323 = vmatprep.subr.bf16.mxu1 %v1565_v0 }
 0x316   :  { %1324 = vmatpush3.bf16.msra.mxu1 %v1659_v3 }
 0x317   :  { %1325 = vmatprep.subr.bf16.mxu1 %v1565_v0 }
 0x31a   :  { %1326 = vmatpush3.bf16.msra.mxu1 %v1665_v4 }
 0x31b   :  { %1327 = vmatprep.subr.bf16.mxu1 %v1565_v0 }
 0x31e   :  { %1328 = vmatpush3.bf16.msra.mxu1 %v1671_v5 }
 0x31f   :  { %1329 = vmatprep.subr.bf16.mxu1 %v1565_v0 }
 0x322   :  { %1330 = vmatpush3.bf16.msra.mxu1 %v1677_v6 }
 0x323   :  { %1351 = vmatprep.subr.bf16.mxu1 %v1565_v0 }
 0x37e   :  { %v275_v55 = vpop.permute.xlu0 %274 }
 0x38f   :  { %v298_v62 = vpop.permute.xlu0 %297 }
 0x390   :  { %vm299_vm13 = vcmp.eq.s32.totalorder %v298_v62, 1 }
 0x3e0   :  { %v263_v45 = vpop.f32.mrb[0].mxu1 }
 0x3e1   :  { %v264_v46 = vadd.f32 %v263_v45, %v225_v44  ;;  %v1301_v47 = vpop.f32.mrb[1].mxu1 }
 0x3e2   :  { %v266_v48 = vpop.f32.mrb[2].mxu1 }
 0x3e3   :  { %1449 = vtanh.f32 %v264_v46  ;;  %v1302_v49 = vpop.f32.mrb[3].mxu1 }
 0x3e4   :  { %v501_v49 = vsel %vm427_vm10, 1, %v1567_v15  ;;  %vm734_vm10 = vcmp.le.s32.totalorder %v1712_v19, 6 }
 0x3ed   :  { %v1450_v50 = vpop.eup %1449 }
 0x3ee   :  { %279 = vrot.lane.b32.xlu1 %v1450_v50, %s1568_s3  ;;  %v270_v51 = vmul.f32 0.5, %v1450_v50 }
 0x3f0   :  { %v271_v52 = vadd.f32 0.5, %v270_v51  ;;  %v431_v51 = vld [vmem:[#allocation5 + $0x18] sm:$0xff] }
 0x3f2   :  { %v277_v56 = vmul.f32 %v275_v55, %v271_v52 }
 0x460   :  { %v280_v53 = vpop.permute.xlu1 %279 }
 0x461   :  { %v282_v54 = vmul.f32 %v280_v53, %v271_v52 }
 0x463   :  { %284 = vrot.lane.b32.xlu1 %v282_v54, %s1568_s3 }
 0x4d5   :  { %v285_v57 = vpop.permute.xlu1 %284 }
 0x4d6   :  { %v287_v58 = vadd.f32 %v285_v57, %v277_v56 }
 0x4d8   :  { %1451 = vtanh.f32 %v287_v58  ;;  %v305_v9 = vsel %vm299_vm13, %v287_v58, %v275_v55 }
 0x4e2   :  { %v1452_v59 = vpop.eup %1451 }
 0x4e3   :  { %290 = vrot.lane.b32.xlu1 %v1452_v59, %s1568_s3 }
 0x4e7   :  { %301 = vrot.lane.b32.xlu1 %v294_v60, %s1563_s0 }
 0x555   :  { %v291_v61 = vpop.permute.xlu1 %290 }
 0x556   :  { %v293_v63 = vmul.f32 %v291_v61, %v271_v52 }
 0x559   :  { %v302_v7 = vpop.permute.xlu1 %301 }
 0x55a   :  { %v304_v8 = vsel %vm299_vm13, %v293_v63, %v302_v7  ;;  %vm529_vm13 = vcmp.gt.s32.totalorder %v1717_v20, 4 }
 0x55b   :  { %312 = vrot.lane.b32.xlu1 %v304_v8, %s1563_s0  ;;  %317 = vrot.lane.b32.xlu0 %v304_v8, %s1569_s1  ;;  %vm530_vm14 = vmand %vm528_vm12, %vm529_vm13 }
 0x55f   :  { %307 = vrot.lane.b32.xlu0 %v305_v9, %s1569_s1 }
 0x5cd   :  { %v313_v10 = vpop.permute.xlu1 %312  ;;  %v318_v11 = vpop.permute.xlu0 %317 }
 0x5ce   :  { %315 = vst.msk [vmem:[#allocation4] sm:$0xff] %vm61_vm2, %v313_v10 }
 0x5cf   :  { %316 = vst.msk [vmem:[#allocation2] sm:$0xf] %vm210_vm7, %v313_v10 }
 0x5d0   :  { %320 = vst.msk [vmem:[#allocation2 + $0x4] sm:$0xf] %vm215_vm8, %v318_v11 }
 0x5d1   :  { %321 = vst.msk [vmem:[#allocation2] sm:$0xf0] %vm217_vm9, %v304_v8  ;;  %v308_v12 = vpop.permute.xlu0 %307 }
 0x5d2   :  { %310 = vst.msk [vmem:[#allocation3] sm:$0xff] %vm61_vm2, %v308_v12 }
 0x5d5   :  { %v397_v18 = vld [vmem:[#allocation4] sm:$0xff] }
 0x5d8   :  { %v325_v13 = vld [vmem:[#allocation2] sm:$0xff] }
 0x5d9   :  { %v326_v14 = vpack.c.bf16 %v325_v13, %v325_v13  ;;  %v375_v16 = vld [vmem:[#allocation3] sm:$0xff] }
 0x5da   :  { %377 = vrot.lane.b32.xlu0 %v375_v16, %s1568_s3 }
 0x5db   :  { %1316 = vmatmul.mubr.msk.bf16.vlgmr.msra.gmra.mrb[4].mxu0 %vm59_vm0, %v326_v14 }
 0x5dc   :  { %1336 = vmatpush3.bf16.msra.mxu0 %v1650_v1  ;;  %1347 = vmatprep.mubr.msk.bf16.mxu0 %vm1566_vm1, %v1565_v0 }
 0x5dd   :  { %1337 = vmatprep.subr.bf16.mxu0 %v1565_v0 }
 0x5de   :  { %400 = vperm.xlu0 %1436, %v398_v17  }
 0x5e0   :  { %1338 = vmatpush3.bf16.msra.mxu0 %v1653_v2 }
 0x5e1   :  { %1339 = vmatprep.subr.bf16.mxu0 %v1565_v0 }
 0x5e2   :  { %404 = vrot.lane.b32.xlu0 %v397_v18, %s1563_s0 }
 0x5e4   :  { %1340 = vmatpush3.bf16.msra.mxu0 %v1659_v3 }
 0x5e5   :  { %1341 = vmatprep.subr.bf16.mxu0 %v1565_v0 }
 0x5e8   :  { %1342 = vmatpush3.bf16.msra.mxu0 %v1665_v4 }
 0x5e9   :  { %1343 = vmatprep.subr.bf16.mxu0 %v1565_v0 }
 0x5ec   :  { %1344 = vmatpush3.bf16.msra.mxu0 %v1671_v5 }
 0x5ed   :  { %1345 = vmatprep.subr.bf16.mxu0 %v1565_v0 }
 0x5f0   :  { %1346 = vmatpush3.bf16.msra.mxu0 %v1677_v6 }
 0x5f1   :  { %1367 = vmatprep.subr.bf16.mxu0 %v1565_v0 }
 0x64c   :  { %v378_v32 = vpop.permute.xlu0 %377 }
 0x65d   :  { %v401_v37 = vpop.permute.xlu0 %400 }
 0x65e   :  { %vm402_vm4 = vcmp.eq.s32.totalorder %v401_v37, 1 }
 0x661   :  { %v405_v40 = vpop.permute.xlu0 %404 }
 0x6ae   :  { %v366_v22 = vpop.f32.mrb[4].mxu0 }
 0x6af   :  { %v367_v23 = vadd.f32 %v366_v22, %v328_v21  ;;  %v1317_v24 = vpop.f32.mrb[5].mxu0 }
 0x6b0   :  { %v369_v25 = vpop.f32.mrb[6].mxu0 }
 0x6b1   :  { %1453 = vtanh.f32 %v367_v23  ;;  %v1318_v26 = vpop.f32.mrb[7].mxu0  ;;  %v604_v25 = vsel %vm530_vm14, 1, %v1567_v15  ;;  %vm837_vm14 = vcmp.le.s32.totalorder %v1712_v19, 7 }
 0x6bb   :  { %v1454_v27 = vpop.eup %1453 }
 0x6bc   :  { %382 = vrot.lane.b32.xlu1 %v1454_v27, %s1568_s3  ;;  %v373_v28 = vmul.f32 0.5, %v1454_v27  ;;  %v534_v27 = vld [vmem:[#allocation5 + $0x20] sm:$0xff] }
 0x6be   :  { %v374_v29 = vadd.f32 0.5, %v373_v28 }
 0x6c0   :  { %v380_v33 = vmul.f32 %v378_v32, %v374_v29 }
 0x72e   :  { %v383_v30 = vpop.permute.xlu1 %382 }
 0x72f   :  { %v385_v31 = vmul.f32 %v383_v30, %v374_v29 }
 0x731   :  { %387 = vrot.lane.b32.xlu1 %v385_v31, %s1568_s3 }
 0x7a3   :  { %v388_v34 = vpop.permute.xlu1 %387 }
 0x7a4   :  { %v390_v35 = vadd.f32 %v388_v34, %v380_v33 }
 0x7a6   :  { %1455 = vtanh.f32 %v390_v35  ;;  %v408_v42 = vsel %vm402_vm4, %v390_v35, %v378_v32 }
 0x7b0   :  { %v1456_v36 = vpop.eup %1455 }
 0x7b1   :  { %393 = vrot.lane.b32.xlu1 %v1456_v36, %s1568_s3 }
 0x823   :  { %v394_v38 = vpop.permute.xlu1 %393 }
 0x824   :  { %v396_v39 = vmul.f32 %v394_v38, %v374_v29 }
 0x826   :  { %v407_v41 = vsel %vm402_vm4, %v396_v39, %v405_v40  ;;  %vm632_vm4 = vcmp.gt.s32.totalorder %v1717_v20, 5 }
 0x827   :  { %415 = vrot.lane.b32.xlu0 %v407_v41, %s1563_s0  ;;  %420 = vrot.lane.b32.xlu1 %v407_v41, %s1569_s1  ;;  %vm633_vm5 = vmand %vm631_vm3, %vm632_vm4  ;;  %vm940_vm4 = vcmp.le.s32.totalorder %v1712_v19, 8 }
 0x82b   :  { %410 = vrot.lane.b32.xlu1 %v408_v42, %s1569_s1 }
 0x899   :  { %v416_v43 = vpop.permute.xlu0 %415  ;;  %v421_v44 = vpop.permute.xlu1 %420 }
 0x89a   :  { %418 = vst.msk [vmem:[#allocation4] sm:$0xff] %vm61_vm2, %v416_v43 }
 0x89b   :  { %419 = vst.msk [vmem:[#allocation2] sm:$0xf] %vm210_vm7, %v416_v43 }
 0x89c   :  { %423 = vst.msk [vmem:[#allocation2 + $0x4] sm:$0xf] %vm215_vm8, %v421_v44 }
 0x89d   :  { %424 = vst.msk [vmem:[#allocation2] sm:$0xf0] %vm217_vm9, %v407_v41  ;;  %v411_v45 = vpop.permute.xlu1 %410 }
 0x89e   :  { %413 = vst.msk [vmem:[#allocation3] sm:$0xff] %vm61_vm2, %v411_v45 }
 0x8a1   :  { %v500_v50 = vld [vmem:[#allocation4] sm:$0xff] }
 0x8a4   :  { %v428_v46 = vld [vmem:[#allocation2] sm:$0xff] }
 0x8a5   :  { %v429_v47 = vpack.c.bf16 %v428_v46, %v428_v46  ;;  %v478_v48 = vld [vmem:[#allocation3] sm:$0xff] }
 0x8a6   :  { %480 = vrot.lane.b32.xlu1 %v478_v48, %s1568_s3 }
 0x8a7   :  { %1332 = vmatmul.mubr.msk.bf16.vlgmr.msra.gmra.mrb[4].mxu1 %vm59_vm0, %v429_v47 }
 0x8a8   :  { %1352 = vmatpush3.bf16.msra.mxu1 %v1650_v1  ;;  %1363 = vmatprep.mubr.msk.bf16.mxu1 %vm1566_vm1, %v1565_v0 }
 0x8a9   :  { %1353 = vmatprep.subr.bf16.mxu1 %v1565_v0 }
 0x8aa   :  { %503 = vperm.xlu1 %1435, %v501_v49  }
 0x8ac   :  { %1354 = vmatpush3.bf16.msra.mxu1 %v1653_v2 }
 0x8ad   :  { %1355 = vmatprep.subr.bf16.mxu1 %v1565_v0 }
 0x8ae   :  { %507 = vrot.lane.b32.xlu1 %v500_v50, %s1563_s0 }
 0x8b0   :  { %1356 = vmatpush3.bf16.msra.mxu1 %v1659_v3 }
 0x8b1   :  { %1357 = vmatprep.subr.bf16.mxu1 %v1565_v0 }
 0x8b4   :  { %1358 = vmatpush3.bf16.msra.mxu1 %v1665_v4 }
 0x8b5   :  { %1359 = vmatprep.subr.bf16.mxu1 %v1565_v0 }
 0x8b8   :  { %1360 = vmatpush3.bf16.msra.mxu1 %v1671_v5 }
 0x8b9   :  { %1361 = vmatprep.subr.bf16.mxu1 %v1565_v0 }
 0x8bc   :  { %1362 = vmatpush3.bf16.msra.mxu1 %v1677_v6 }
 0x8bd   :  { %1383 = vmatprep.subr.bf16.mxu1 %v1565_v0 }
 0x918   :  { %v481_v62 = vpop.permute.xlu1 %480 }
 0x929   :  { %v504_v10 = vpop.permute.xlu1 %503 }
 0x92a   :  { %vm505_vm11 = vcmp.eq.s32.totalorder %v504_v10, 1 }
 0x92d   :  { %v508_v13 = vpop.permute.xlu1 %507 }
 0x97a   :  { %v469_v52 = vpop.f32.mrb[4].mxu1 }
 0x97b   :  { %v470_v53 = vadd.f32 %v469_v52, %v431_v51  ;;  %v1333_v54 = vpop.f32.mrb[5].mxu1 }
 0x97c   :  { %v472_v55 = vpop.f32.mrb[6].mxu1 }
 0x97d   :  { %1457 = vtanh.f32 %v470_v53  ;;  %v1334_v56 = vpop.f32.mrb[7].mxu1  ;;  %v707_v55 = vsel %vm633_vm5, 1, %v1567_v15  ;;  %vm941_vm5 = vcmp.gt.s32.totalorder %v1717_v20, 8 }
 0x987   :  { %v1458_v57 = vpop.eup %1457 }
 0x988   :  { %485 = vrot.lane.b32.xlu0 %v1458_v57, %s1568_s3  ;;  %v476_v58 = vmul.f32 0.5, %v1458_v57  ;;  %v637_v57 = vld [vmem:[#allocation5 + $0x28] sm:$0xff] }
 0x98a   :  { %v477_v59 = vadd.f32 0.5, %v476_v58 }
 0x98c   :  { %v483_v63 = vmul.f32 %v481_v62, %v477_v59 }
 0x9fa   :  { %v486_v60 = vpop.permute.xlu0 %485 }
 0x9fb   :  { %v488_v61 = vmul.f32 %v486_v60, %v477_v59 }
 0x9fd   :  { %490 = vrot.lane.b32.xlu0 %v488_v61, %s1568_s3 }
 0xa6f   :  { %v491_v7 = vpop.permute.xlu0 %490 }
 0xa70   :  { %v493_v8 = vadd.f32 %v491_v7, %v483_v63 }
 0xa72   :  { %1459 = vtanh.f32 %v493_v8  ;;  %v511_v16 = vsel %vm505_vm11, %v493_v8, %v481_v62 }
 0xa7c   :  { %v1460_v9 = vpop.eup %1459 }
 0xa7d   :  { %496 = vrot.lane.b32.xlu0 %v1460_v9, %s1568_s3 }
 0xaef   :  { %v497_v11 = vpop.permute.xlu0 %496 }
 0xaf0   :  { %v499_v12 = vmul.f32 %v497_v11, %v477_v59 }
 0xaf2   :  { %v510_v14 = vsel %vm505_vm11, %v499_v12, %v508_v13  ;;  %vm735_vm11 = vcmp.gt.s32.totalorder %v1717_v20, 6 }
 0xaf3   :  { %518 = vrot.lane.b32.xlu1 %v510_v14, %s1563_s0  ;;  %523 = vrot.lane.b32.xlu0 %v510_v14, %s1569_s1  ;;  %vm736_vm12 = vmand %vm734_vm10, %vm735_vm11 }
 0xaf7   :  { %513 = vrot.lane.b32.xlu0 %v511_v16, %s1569_s1 }
 0xb65   :  { %v519_v17 = vpop.permute.xlu1 %518  ;;  %v524_v18 = vpop.permute.xlu0 %523 }
 0xb66   :  { %521 = vst.msk [vmem:[#allocation4] sm:$0xff] %vm61_vm2, %v519_v17 }
 0xb67   :  { %522 = vst.msk [vmem:[#allocation2] sm:$0xf] %vm210_vm7, %v519_v17 }
 0xb68   :  { %526 = vst.msk [vmem:[#allocation2 + $0x4] sm:$0xf] %vm215_vm8, %v524_v18 }
 0xb69   :  { %527 = vst.msk [vmem:[#allocation2] sm:$0xf0] %vm217_vm9, %v510_v14  ;;  %v514_v21 = vpop.permute.xlu0 %513 }
 0xb6a   :  { %516 = vst.msk [vmem:[#allocation3] sm:$0xff] %vm61_vm2, %v514_v21 }
 0xb6d   :  { %v603_v26 = vld [vmem:[#allocation4] sm:$0xff] }
 0xb70   :  { %v531_v22 = vld [vmem:[#allocation2] sm:$0xff] }
 0xb71   :  { %v532_v23 = vpack.c.bf16 %v531_v22, %v531_v22  ;;  %v581_v24 = vld [vmem:[#allocation3] sm:$0xff] }
 0xb72   :  { %583 = vrot.lane.b32.xlu0 %v581_v24, %s1568_s3 }
 0xb73   :  { %1348 = vmatmul.mubr.msk.bf16.vlgmr.msra.gmra.mrb[8].mxu0 %vm59_vm0, %v532_v23 }
 0xb74   :  { %1368 = vmatpush3.bf16.msra.mxu0 %v1650_v1  ;;  %1379 = vmatprep.mubr.msk.bf16.mxu0 %vm1566_vm1, %v1565_v0 }
 0xb75   :  { %1369 = vmatprep.subr.bf16.mxu0 %v1565_v0 }
 0xb76   :  { %606 = vperm.xlu0 %1436, %v604_v25  }
 0xb78   :  { %1370 = vmatpush3.bf16.msra.mxu0 %v1653_v2 }
 0xb79   :  { %1371 = vmatprep.subr.bf16.mxu0 %v1565_v0 }
 0xb7a   :  { %610 = vrot.lane.b32.xlu0 %v603_v26, %s1563_s0 }
 0xb7c   :  { %1372 = vmatpush3.bf16.msra.mxu0 %v1659_v3 }
 0xb7d   :  { %1373 = vmatprep.subr.bf16.mxu0 %v1565_v0 }
 0xb80   :  { %1374 = vmatpush3.bf16.msra.mxu0 %v1665_v4 }
 0xb81   :  { %1375 = vmatprep.subr.bf16.mxu0 %v1565_v0 }
 0xb84   :  { %1376 = vmatpush3.bf16.msra.mxu0 %v1671_v5 }
 0xb85   :  { %1377 = vmatprep.subr.bf16.mxu0 %v1565_v0 }
 0xb88   :  { %1378 = vmatpush3.bf16.msra.mxu0 %v1677_v6 }
 0xb89   :  { %1399 = vmatprep.subr.bf16.mxu0 %v1565_v0 }
 0xbe4   :  { %v584_v38 = vpop.permute.xlu0 %583 }
 0xbf5   :  { %v607_v43 = vpop.permute.xlu0 %606 }
 0xbf6   :  { %vm608_vm15 = vcmp.eq.s32.totalorder %v607_v43, 1 }
 0xbf9   :  { %v611_v46 = vpop.permute.xlu0 %610 }
 0xc46   :  { %v572_v28 = vpop.f32.mrb[8].mxu0 }
 0xc47   :  { %v573_v29 = vadd.f32 %v572_v28, %v534_v27  ;;  %v1349_v30 = vpop.f32.mrb[9].mxu0 }
 0xc48   :  { %v575_v31 = vpop.f32.mrb[10].mxu0 }
 0xc49   :  { %1461 = vtanh.f32 %v573_v29  ;;  %v1350_v32 = vpop.f32.mrb[11].mxu0  ;;  %v810_v31 = vsel %vm736_vm12, 1, %v1567_v15 }
 0xc53   :  { %v1462_v33 = vpop.eup %1461 }
 0xc54   :  { %588 = vrot.lane.b32.xlu1 %v1462_v33, %s1568_s3  ;;  %v579_v34 = vmul.f32 0.5, %v1462_v33 }
 0xc56   :  { %v580_v35 = vadd.f32 0.5, %v579_v34 }
 0xc58   :  { %v586_v39 = vmul.f32 %v584_v38, %v580_v35 }
 0xcc6   :  { %v589_v36 = vpop.permute.xlu1 %588 }
 0xcc7   :  { %v591_v37 = vmul.f32 %v589_v36, %v580_v35 }
 0xcc9   :  { %593 = vrot.lane.b32.xlu1 %v591_v37, %s1568_s3 }
 0xd3b   :  { %v594_v40 = vpop.permute.xlu1 %593 }
 0xd3c   :  { %v596_v41 = vadd.f32 %v594_v40, %v586_v39 }
 0xd3e   :  { %1463 = vtanh.f32 %v596_v41  ;;  %v614_v48 = vsel %vm608_vm15, %v596_v41, %v584_v38 }
 0xd48   :  { %v1464_v42 = vpop.eup %1463 }
 0xd49   :  { %599 = vrot.lane.b32.xlu1 %v1464_v42, %s1568_s3 }
 0xdbb   :  { %v600_v44 = vpop.permute.xlu1 %599 }
 0xdbc   :  { %v602_v45 = vmul.f32 %v600_v44, %v580_v35 }
 0xdbe   :  { %v613_v47 = vsel %vm608_vm15, %v602_v45, %v611_v46  ;;  %vm838_vm15 = vcmp.gt.s32.totalorder %v1717_v20, 7 }
 0xdbf   :  { %621 = vrot.lane.b32.xlu0 %v613_v47, %s1563_s0  ;;  %626 = vrot.lane.b32.xlu1 %v613_v47, %s1569_s1  ;;  %vm839_vm3 = vmand %vm837_vm14, %vm838_vm15 }
 0xdc3   :  { %616 = vrot.lane.b32.xlu1 %v614_v48, %s1569_s1 }
 0xe31   :  { %v622_v49 = vpop.permute.xlu0 %621  ;;  %v627_v50 = vpop.permute.xlu1 %626 }
 0xe32   :  { %624 = vst.msk [vmem:[#allocation4] sm:$0xff] %vm61_vm2, %v622_v49 }
 0xe33   :  { %625 = vst.msk [vmem:[#allocation2] sm:$0xf] %vm210_vm7, %v622_v49 }
 0xe34   :  { %629 = vst.msk [vmem:[#allocation2 + $0x4] sm:$0xf] %vm215_vm8, %v627_v50 }
 0xe35   :  { %630 = vst.msk [vmem:[#allocation2] sm:$0xf0] %vm217_vm9, %v613_v47  ;;  %v617_v51 = vpop.permute.xlu1 %616 }
 0xe36   :  { %619 = vst.msk [vmem:[#allocation3] sm:$0xff] %vm61_vm2, %v617_v51 }
 0xe39   :  { %v706_v56 = vld [vmem:[#allocation4] sm:$0xff] }
 0xe3c   :  { %v634_v52 = vld [vmem:[#allocation2] sm:$0xff] }
 0xe3d   :  { %v635_v53 = vpack.c.bf16 %v634_v52, %v634_v52  ;;  %v684_v54 = vld [vmem:[#allocation3] sm:$0xff] }
 0xe3e   :  { %686 = vrot.lane.b32.xlu1 %v684_v54, %s1568_s3 }
 0xe3f   :  { %1364 = vmatmul.mubr.msk.bf16.vlgmr.msra.gmra.mrb[8].mxu1 %vm59_vm0, %v635_v53 }
 0xe40   :  { %1384 = vmatpush3.bf16.msra.mxu1 %v1650_v1  ;;  %1395 = vmatprep.mubr.msk.bf16.mxu1 %vm1566_vm1, %v1565_v0 }
 0xe41   :  { %1385 = vmatprep.subr.bf16.mxu1 %v1565_v0 }
 0xe42   :  { %709 = vperm.xlu1 %1435, %v707_v55   ;;  %v913_v55 = vsel %vm839_vm3, 1, %v1567_v15 }
 0xe44   :  { %1386 = vmatpush3.bf16.msra.mxu1 %v1653_v2 }
 0xe45   :  { %1387 = vmatprep.subr.bf16.mxu1 %v1565_v0 }
 0xe46   :  { %713 = vrot.lane.b32.xlu1 %v706_v56, %s1563_s0 }
 0xe48   :  { %1388 = vmatpush3.bf16.msra.mxu1 %v1659_v3 }
 0xe49   :  { %1389 = vmatprep.subr.bf16.mxu1 %v1565_v0 }
 0xe4c   :  { %1390 = vmatpush3.bf16.msra.mxu1 %v1665_v4 }
 0xe4d   :  { %1391 = vmatprep.subr.bf16.mxu1 %v1565_v0 }
 0xe50   :  { %1392 = vmatpush3.bf16.msra.mxu1 %v1671_v5 }
 0xe51   :  { %1393 = vmatprep.subr.bf16.mxu1 %v1565_v0 }
 0xe54   :  { %1394 = vmatpush3.bf16.msra.mxu1 %v1677_v6 }
 0xe55   :  { %1415 = vmatprep.subr.bf16.mxu1 %v1565_v0 }
 0xeb0   :  { %v687_v11 = vpop.permute.xlu1 %686 }
 0xec1   :  { %v710_v17 = vpop.permute.xlu1 %709 }
 0xec2   :  { %vm711_vm6 = vcmp.eq.s32.totalorder %v710_v17, 1 }
 0xec5   :  { %v714_v22 = vpop.permute.xlu1 %713 }
 0xf12   :  { %v675_v58 = vpop.f32.mrb[8].mxu1 }
 0xf13   :  { %v676_v59 = vadd.f32 %v675_v58, %v637_v57  ;;  %v1365_v60 = vpop.f32.mrb[9].mxu1  ;;  %v843_v57 = vld [vmem:[#allocation5 + $0x38] sm:$0xff] }
 0xf14   :  { %v678_v61 = vpop.f32.mrb[10].mxu1 }
 0xf15   :  { %1465 = vtanh.f32 %v676_v59  ;;  %v1366_v62 = vpop.f32.mrb[11].mxu1 }
 0xf1f   :  { %v1466_v63 = vpop.eup %1465 }
 0xf20   :  { %691 = vrot.lane.b32.xlu0 %v1466_v63, %s1568_s3  ;;  %v682_v7 = vmul.f32 0.5, %v1466_v63 }
 0xf22   :  { %v683_v8 = vadd.f32 0.5, %v682_v7 }
 0xf24   :  { %v689_v12 = vmul.f32 %v687_v11, %v683_v8 }
 0xf92   :  { %v692_v9 = vpop.permute.xlu0 %691 }
 0xf93   :  { %v694_v10 = vmul.f32 %v692_v9, %v683_v8 }
 0xf95   :  { %696 = vrot.lane.b32.xlu0 %v694_v10, %s1568_s3 }
0x1007   :  { %v697_v13 = vpop.permute.xlu0 %696 }
0x1008   :  { %v699_v14 = vadd.f32 %v697_v13, %v689_v12 }
0x100a   :  { %1467 = vtanh.f32 %v699_v14  ;;  %v717_v24 = vsel %vm711_vm6, %v699_v14, %v687_v11 }
0x1014   :  { %v1468_v16 = vpop.eup %1467 }
0x1015   :  { %702 = vrot.lane.b32.xlu0 %v1468_v16, %s1568_s3 }
0x1087   :  { %v703_v18 = vpop.permute.xlu0 %702 }
0x1088   :  { %v705_v21 = vmul.f32 %v703_v18, %v683_v8 }
0x108a   :  { %v716_v23 = vsel %vm711_vm6, %v705_v21, %v714_v22  ;;  %vm942_vm6 = vmand %vm940_vm4, %vm941_vm5 }
0x108b   :  { %724 = vrot.lane.b32.xlu1 %v716_v23, %s1563_s0  ;;  %729 = vrot.lane.b32.xlu0 %v716_v23, %s1569_s1 }
0x108f   :  { %719 = vrot.lane.b32.xlu0 %v717_v24, %s1569_s1 }
0x10fd   :  { %v725_v25 = vpop.permute.xlu1 %724  ;;  %v730_v26 = vpop.permute.xlu0 %729 }
0x10fe   :  { %727 = vst.msk [vmem:[#allocation4] sm:$0xff] %vm61_vm2, %v725_v25 }
0x10ff   :  { %728 = vst.msk [vmem:[#allocation2] sm:$0xf] %vm210_vm7, %v725_v25 }
0x1100   :  { %732 = vst.msk [vmem:[#allocation2 + $0x4] sm:$0xf] %vm215_vm8, %v730_v26 }
0x1101   :  { %733 = vst.msk [vmem:[#allocation2] sm:$0xf0] %vm217_vm9, %v716_v23  ;;  %v720_v27 = vpop.permute.xlu0 %719 }
0x1102   :  { %722 = vst.msk [vmem:[#allocation3] sm:$0xff] %vm61_vm2, %v720_v27 }
0x1105   :  { %v809_v32 = vld [vmem:[#allocation4] sm:$0xff] }
0x1108   :  { %v737_v28 = vld [vmem:[#allocation2] sm:$0xff] }
0x1109   :  { %v738_v29 = vpack.c.bf16 %v737_v28, %v737_v28  ;;  %v787_v30 = vld [vmem:[#allocation3] sm:$0xff] }
0x110a   :  { %789 = vrot.lane.b32.xlu0 %v787_v30, %s1568_s3 }
0x110b   :  { %1380 = vmatmul.mubr.msk.bf16.vlgmr.msra.gmra.mrb[12].mxu0 %vm59_vm0, %v738_v29 }
0x110c   :  { %1400 = vmatpush3.bf16.msra.mxu0 %v1650_v1  ;;  %1411 = vmatprep.mubr.msk.bf16.mxu0 %vm1566_vm1, %v1565_v0  ;;  %v740_v1 = vld [vmem:[#allocation5 + $0x30] sm:$0xff] }
0x110d   :  { %1401 = vmatprep.subr.bf16.mxu0 %v1565_v0 }
0x110e   :  { %812 = vperm.xlu0 %1436, %v810_v31   ;;  %v1016_v31 = vsel %vm942_vm6, 1, %v1567_v15 }
0x1110   :  { %1402 = vmatpush3.bf16.msra.mxu0 %v1653_v2 }
0x1111   :  { %1403 = vmatprep.subr.bf16.mxu0 %v1565_v0 }
0x1112   :  { %816 = vrot.lane.b32.xlu0 %v809_v32, %s1563_s0 }
0x1114   :  { %1404 = vmatpush3.bf16.msra.mxu0 %v1659_v3 }
0x1115   :  { %1405 = vmatprep.subr.bf16.mxu0 %v1565_v0 }
0x1118   :  { %1406 = vmatpush3.bf16.msra.mxu0 %v1665_v4 }
0x1119   :  { %1407 = vmatprep.subr.bf16.mxu0 %v1565_v0 }
0x111c   :  { %1408 = vmatpush3.bf16.msra.mxu0 %v1671_v5 }
0x111d   :  { %1409 = vmatprep.subr.bf16.mxu0 %v1565_v0 }
0x1120   :  { %1410 = vmatpush3.bf16.msra.mxu0 %v1677_v6 }
0x117c   :  { %v790_v5 = vpop.permute.xlu0 %789 }
0x118d   :  { %v813_v43 = vpop.permute.xlu0 %812 }
0x118e   :  { %vm814_vm13 = vcmp.eq.s32.totalorder %v813_v43, 1 }
0x1191   :  { %v817_v46 = vpop.permute.xlu0 %816 }
0x11de   :  { %v778_v2 = vpop.f32.mrb[12].mxu0 }
0x11df   :  { %v779_v33 = vadd.f32 %v778_v2, %v740_v1  ;;  %v1381_v34 = vpop.f32.mrb[13].mxu0  ;;  %v946_v1 = vld [vmem:[#allocation5 + $0x40] sm:$0xff] }
0x11e0   :  { %v781_v35 = vpop.f32.mrb[14].mxu0 }
0x11e1   :  { %1469 = vtanh.f32 %v779_v33  ;;  %v1382_v36 = vpop.f32.mrb[15].mxu0 }
0x11eb   :  { %v1470_v3 = vpop.eup %1469 }
0x11ec   :  { %794 = vrot.lane.b32.xlu1 %v1470_v3, %s1568_s3  ;;  %v785_v37 = vmul.f32 0.5, %v1470_v3 }
0x11ee   :  { %v786_v4 = vadd.f32 0.5, %v785_v37 }
0x11f0   :  { %v792_v40 = vmul.f32 %v790_v5, %v786_v4 }
0x125e   :  { %v795_v38 = vpop.permute.xlu1 %794 }
0x125f   :  { %v797_v39 = vmul.f32 %v795_v38, %v786_v4 }
0x1261   :  { %799 = vrot.lane.b32.xlu1 %v797_v39, %s1568_s3 }
0x12d3   :  { %v800_v41 = vpop.permute.xlu1 %799 }
0x12d4   :  { %v802_v6 = vadd.f32 %v800_v41, %v792_v40  ;;  %v1443_v41 = vld [vmem:[%s2007_s6] sm:$0xff]  }
0x12d6   :  { %1471 = vtanh.f32 %v802_v6  ;;  %v820_v48 = vsel %vm814_vm13, %v802_v6, %v790_v5  ;;  %v1444_v6 = vld [vmem:[%s2007_s6 + $0x8] sm:$0xff]  }
0x12e0   :  { %v1472_v42 = vpop.eup %1471 }
0x12e1   :  { %805 = vrot.lane.b32.xlu1 %v1472_v42, %s1568_s3 }
0x1353   :  { %v806_v44 = vpop.permute.xlu1 %805 }
0x1354   :  { %v808_v45 = vmul.f32 %v806_v44, %v786_v4 }
0x1356   :  { %v819_v47 = vsel %vm814_vm13, %v808_v45, %v817_v46 }
0x1357   :  { %827 = vrot.lane.b32.xlu0 %v819_v47, %s1563_s0  ;;  %832 = vrot.lane.b32.xlu1 %v819_v47, %s1569_s1 }
0x135b   :  { %822 = vrot.lane.b32.xlu1 %v820_v48, %s1569_s1 }
0x13c9   :  { %v828_v49 = vpop.permute.xlu0 %827  ;;  %v833_v50 = vpop.permute.xlu1 %832 }
0x13ca   :  { %830 = vst.msk [vmem:[#allocation4] sm:$0xff] %vm61_vm2, %v828_v49 }
0x13cb   :  { %831 = vst.msk [vmem:[#allocation2] sm:$0xf] %vm210_vm7, %v828_v49 }
0x13cc   :  { %835 = vst.msk [vmem:[#allocation2 + $0x4] sm:$0xf] %vm215_vm8, %v833_v50 }
0x13cd   :  { %836 = vst.msk [vmem:[#allocation2] sm:$0xf0] %vm217_vm9, %v819_v47  ;;  %v823_v51 = vpop.permute.xlu1 %822  ;;  %v1044_v47 = vlaneseq }
0x13ce   :  { %825 = vst.msk [vmem:[#allocation3] sm:$0xff] %vm61_vm2, %v823_v51 }
0x13cf   :  { %v1045_v48 = vshrl.u32 %v1044_v47, 7 }
0x13d1   :  { %v912_v56 = vld [vmem:[#allocation4] sm:$0xff]  ;;  %vm1046_vm10 = vcmp.ge.s32.totalorder %v1045_v48, 4 }
0x13d2   :  { %v1198_v50 = vsel %vm1046_vm10, 1.0, %v1565_v0 }
0x13d4   :  { %v840_v52 = vld [vmem:[#allocation2] sm:$0xff] }
0x13d5   :  { %v841_v53 = vpack.c.bf16 %v840_v52, %v840_v52  ;;  %v890_v54 = vld [vmem:[#allocation3] sm:$0xff] }
0x13d6   :  { %892 = vrot.lane.b32.xlu1 %v890_v54, %s1568_s3 }
0x13d7   :  { %1396 = vmatmul.mubr.msk.bf16.vlgmr.msra.gmra.mrb[12].mxu1 %vm59_vm0, %v841_v53 }
0x13d8   :  { %1419 = vmatprep.mubr.msk.bf16.mxu1 %vm1566_vm1, %v1565_v0  ;;  %1416 = vmatpush3.bf16.msra.mxu1 %v1443_v41 }
0x13d9   :  { %1417 = vmatprep.subr.bf16.mxu1 %v1565_v0 }
0x13da   :  { %915 = vperm.xlu1 %1435, %v913_v55  }
0x13dc   :  { %1418 = vmatpush3.bf16.msra.mxu1 %v1444_v6 }
0x13de   :  { %919 = vrot.lane.b32.xlu1 %v912_v56, %s1563_s0 }
0x1448   :  { %v893_v11 = vpop.permute.xlu1 %892 }
0x1459   :  { %v916_v17 = vpop.permute.xlu1 %915 }
0x145a   :  { %vm917_vm1 = vcmp.eq.s32.totalorder %v916_v17, 1  ;;  %v1199_v17 = vld [vmem:[%s2005_s4] ss:$0 sm:$0xff]  ;;  %s1570_s4 = smov [#allocation10]  }
0x145d   :  { %v920_v22 = vpop.permute.xlu1 %919 }
0x14aa   :  { %v881_v58 = vpop.f32.mrb[12].mxu1 }
0x14ab   :  { %v882_v59 = vadd.f32 %v881_v58, %v843_v57  ;;  %v1397_v60 = vpop.f32.mrb[13].mxu1 }
0x14ac   :  { %v884_v61 = vpop.f32.mrb[14].mxu1 }
0x14ad   :  { %1473 = vtanh.f32 %v882_v59  ;;  %v1398_v62 = vpop.f32.mrb[15].mxu1 }
0x14b7   :  { %v1474_v63 = vpop.eup %1473 }
0x14b8   :  { %897 = vrot.lane.b32.xlu0 %v1474_v63, %s1568_s3  ;;  %v888_v7 = vmul.f32 0.5, %v1474_v63 }
0x14ba   :  { %v889_v8 = vadd.f32 0.5, %v888_v7 }
0x14bc   :  { %v895_v12 = vmul.f32 %v893_v11, %v889_v8 }
0x152a   :  { %v898_v9 = vpop.permute.xlu0 %897 }
0x152b   :  { %v900_v10 = vmul.f32 %v898_v9, %v889_v8 }
0x152d   :  { %902 = vrot.lane.b32.xlu0 %v900_v10, %s1568_s3 }
0x159f   :  { %v903_v13 = vpop.permute.xlu0 %902 }
0x15a0   :  { %v905_v14 = vadd.f32 %v903_v13, %v895_v12 }
0x15a2   :  { %1475 = vtanh.f32 %v905_v14  ;;  %v923_v24 = vsel %vm917_vm1, %v905_v14, %v893_v11 }
0x15ac   :  { %v1476_v16 = vpop.eup %1475 }
0x15ad   :  { %908 = vrot.lane.b32.xlu0 %v1476_v16, %s1568_s3 }
0x161f   :  { %v909_v18 = vpop.permute.xlu0 %908 }
0x1620   :  { %v911_v21 = vmul.f32 %v909_v18, %v889_v8 }
0x1622   :  { %v922_v23 = vsel %vm917_vm1, %v911_v21, %v920_v22  ;;  %v1200_v21 = vld [vmem:[%s2006_s5] ss:$0 sm:$0xff]  ;;  %s1173_s5 = sshll.u32 %s1570_s4, 4  ;;  %s1174_s5 = int_to_ptr.vmem [resolvable:$true] %s1173_s5 }
0x1623   :  { %930 = vrot.lane.b32.xlu1 %v922_v23, %s1563_s0  ;;  %935 = vrot.lane.b32.xlu0 %v922_v23, %s1569_s1  ;;  %p1536_p3 = scmp.lt.s32.totalorder %s1174_s5, %s1174_s5 }
0x1627   :  { %925 = vrot.lane.b32.xlu0 %v923_v24, %s1569_s1 }
0x1695   :  { %v931_v25 = vpop.permute.xlu1 %930  ;;  %v936_v26 = vpop.permute.xlu0 %935 }
0x1696   :  { %933 = vst.msk [vmem:[#allocation4] sm:$0xff] %vm61_vm2, %v931_v25 }
0x1697   :  { %934 = vst.msk [vmem:[#allocation2] sm:$0xf] %vm210_vm7, %v931_v25  ;;  %v1201_v25 = vld [vmem:[%s2008_s7] ss:$0 sm:$0xff]  ;;  %s1531_s7 = scalar_lea.vmem %s1174_s5, 128 }
0x1698   :  { %938 = vst.msk [vmem:[#allocation2 + $0x4] sm:$0xf] %vm215_vm8, %v936_v26  ;;  %p1532_p2 = scmp.ne.s32.totalorder %s1174_s5, %s1531_s7  ;;  %p1537_p4 = scmp.lt.s32.totalorder %s1531_s7, %s1531_s7 }
0x1699   :  { %939 = vst.msk [vmem:[#allocation2] sm:$0xf0] %vm217_vm9, %v922_v23  ;;  %v926_v27 = vpop.permute.xlu0 %925 }
0x169a   :  { %928 = vst.msk [vmem:[#allocation3] sm:$0xff] %vm61_vm2, %v926_v27  ;;  %p1538_p5 = por %p1537_p4, %p1536_p3 }
0x169c   :  { %p1539_p6 = pnand %p1538_p5, %p1532_p2 }
0x169d   :  { %v1015_v32 = vld [vmem:[#allocation4] sm:$0xff] }
0x16a0   :  { %v943_v28 = vld [vmem:[#allocation2] sm:$0xff] }
0x16a1   :  { %v944_v29 = vpack.c.bf16 %v943_v28, %v943_v28  ;;  %v993_v30 = vld [vmem:[#allocation3] sm:$0xff] }
0x16a2   :  { %995 = vrot.lane.b32.xlu0 %v993_v30, %s1568_s3 }
0x16a3   :  { %1412 = vmatmul.mubr.msk.bf16.vlgmr.msra.gmra.mrb[16].mxu0 %vm59_vm0, %v944_v29 }
0x16a6   :  { %1018 = vperm.xlu0 %1436, %v1016_v31  }
0x16aa   :  { %1022 = vrot.lane.b32.xlu0 %v1015_v32, %s1563_s0 }
0x1714   :  { %v1945_v15 = vpop.permute.xlu0 %995 }
0x1725   :  { %v1959_v42 = vpop.permute.xlu0 %1018 }
0x1726   :  { %vm1020_vm0 = vcmp.eq.s32.totalorder %v1959_v42, 1 }
0x1729   :  { %v1023_v45 = vpop.permute.xlu0 %1022 }
0x1776   :  { %v984_v2 = vpop.f32.mrb[16].mxu0 }
0x1777   :  { %v985_v33 = vadd.f32 %v984_v2, %v946_v1  ;;  %v1413_v19 = vpop.f32.mrb[17].mxu0 }
0x1778   :  { %v987_v34 = vpop.f32.mrb[18].mxu0 }
0x1779   :  { %1477 = vtanh.f32 %v985_v33  ;;  %v1414_v20 = vpop.f32.mrb[19].mxu0 }
0x1783   :  { %v1478_v35 = vpop.eup %1477 }
0x1784   :  { %1000 = vrot.lane.b32.xlu1 %v1478_v35, %s1568_s3  ;;  %v991_v36 = vmul.f32 0.5, %v1478_v35 }
0x1786   :  { %v992_v3 = vadd.f32 0.5, %v991_v36 }
0x1788   :  { %v998_v38 = vmul.f32 %v1945_v15, %v992_v3 }
0x17f6   :  { %v1001_v37 = vpop.permute.xlu1 %1000 }
0x17f7   :  { %v1003_v4 = vmul.f32 %v1001_v37, %v992_v3 }
0x17f9   :  { %1005 = vrot.lane.b32.xlu1 %v1003_v4, %s1568_s3 }
0x186b   :  { %v1006_v39 = vpop.permute.xlu1 %1005 }
0x186c   :  { %v1948_v5 = vadd.f32 %v1006_v39, %v998_v38 }
0x186e   :  { %1479 = vtanh.f32 %v1948_v5  ;;  %v1026_v19 = vsel %vm1020_vm0, %v1948_v5, %v1945_v15 }
0x1878   :  { %v1480_v40 = vpop.eup %1479 }
0x1879   :  { %1011 = vrot.lane.b32.xlu1 %v1480_v40, %s1568_s3 }
0x18eb   :  { %v1012_v43 = vpop.permute.xlu1 %1011 }
0x18ec   :  { %v1014_v44 = vmul.f32 %v1012_v43, %v992_v3 }
0x18ee   :  { %v1025_v46 = vsel %vm1020_vm0, %v1014_v44, %v1023_v45 }
0x18ef   :  { %1033 = vrot.lane.b32.xlu1 %v1025_v46, %s1563_s0 }
0x1961   :  { %v1034_v49 = vpop.permute.xlu1 %1033 }
0x1962   :  { %1036 = vst.msk [vmem:[#allocation4] sm:$0xff] %vm61_vm2, %v1034_v49 }
0x1963   :  { %1037 = vst.msk [vmem:[#allocation2] sm:$0xf] %vm210_vm7, %v1034_v49 }
0x1969   :  { %v1043_v51 = vld [vmem:[#allocation4] sm:$0xff] }
0x196a   :  { %v1051_v52 = vmul.f32 %v1198_v50, %v1043_v51 }
0x196c   :  { %v1052_v53 = vsel %vm61_vm2, %v1051_v52, 0.0 }
0x196d   :  { %v1053_v54 = vrot.slane %v1052_v53, 4 }
0x196f   :  { %v1054_v55 = vadd.f32 %v1053_v54, %v1052_v53 }
0x1971   :  { %v1055_v56 = vrot.slane %v1054_v55, 2 }
0x1973   :  { %v1056_v57 = vadd.f32 %v1055_v56, %v1054_v55 }
0x1975   :  { %v1057_v58 = vrot.slane %v1056_v57, 1 }
0x1977   :  { %v1058_v59 = vadd.f32 %v1057_v58, %v1056_v57 }
0x1979   :  { %v1059_v60 = vmul.f32 0.25, %v1058_v59 }
0x197b   :  { %v1060_v61 = vsub.f32 %v1043_v51, %v1059_v60 }
0x197d   :  { %v1061_v62 = vmul.f32 %v1060_v61, %v1060_v61 }
0x197f   :  { %v1062_v63 = vmul.f32 %v1198_v50, %v1061_v62 }
0x1981   :  { %v1063_v7 = vsel %vm61_vm2, %v1062_v63, 0.0 }
0x1982   :  { %v1064_v8 = vrot.slane %v1063_v7, 4 }
0x1984   :  { %v1065_v9 = vadd.f32 %v1064_v8, %v1063_v7 }
0x1986   :  { %v1066_v10 = vrot.slane %v1065_v9, 2 }
0x1988   :  { %v1067_v0 = vadd.f32 %v1066_v10, %v1065_v9 }
0x198a   :  { %v1068_v11 = vrot.slane %v1067_v0, 1 }
0x198c   :  { %v1069_v12 = vadd.f32 %v1068_v11, %v1067_v0 }
0x198e   :  { %v1070_v13 = vmul.f32 0.25, %v1069_v12 }
0x1990   :  { %v1071_v14 = vadd.f32 1e-05, %v1070_v13 }
0x1992   :  { %1481 = vrsqrt.f32 %v1071_v14 }
0x199c   :  { %v1482_v16 = vpop.eup %1481 }
0x199d   :  { %v1073_v18 = vmul.f32 %v1482_v16, %v1060_v61 }
0x199f   :  { %v1081_v22 = vmul.f32 %v1199_v17, %v1073_v18 }
0x19a1   :  { %v1089_v23 = vadd.f32 %v1200_v21, %v1081_v22 }
0x19a3   :  { %v1090_v24 = vpack.c.bf16 %v1089_v23, %v1089_v23 }
0x19a5   :  { %1420 = vmatmul.mubr.msk.bf16.vlgmr.msra.gmra.mrb[16].mxu1 %vm61_vm2, %v1090_v24 }
0x1a78   :  { %v1151_v26 = vpop.f32.mrb[16].mxu1 }
0x1a79   :  { %v1152_v27 = vadd.f32 %v1201_v25, %v1151_v26  ;;  %v1421_v28 = vpop.f32.mrb[17].mxu1 }
0x1a7a   :  { %v1154_v29 = vpop.f32.mrb[18].mxu1 }
0x1a7b   :  { %1157 = vmax.xlane.f32.xlu0 %v1152_v27  ;;  %v1422_v30 = vpop.f32.mrb[19].mxu1 }
0x1a91   :  { %1038 = vrot.lane.b32.xlu0 %v1025_v46, %s1569_s1 }
0x1b08   :  { %v1158_v31 = vpop.xlane.xlu0 %1157 }
0x1b09   :  { %v1159_v32 = vsub.f32 %v1152_v27, %v1158_v31 }
0x1b0b   :  { %v1160_v1 = vmul.f32 1.442695, %v1159_v32 }
0x1b0c   :  { %v1039_v2 = vpop.permute.xlu0 %1038 }
0x1b0d   :  { %1483 = vpow2.f32 %v1160_v1  ;;  %1041 = vst.msk [vmem:[#allocation2 + $0x4] sm:$0xf] %vm215_vm8, %v1039_v2 }
0x1b0e   :  { %1042 = vst.msk [vmem:[#allocation2] sm:$0xf0] %vm217_vm9, %v1025_v46 }
0x1b17   :  { %v1484_v33 = vpop.eup %1483 }
0x1b18   :  { %1162 = vadd.xlane.f32.xlu1 %v1484_v33 }
0x1b29   :  { %1028 = vrot.lane.b32.xlu1 %v1026_v19, %s1569_s1 }
0x1ba5   :  { %v1163_v34 = vpop.xlane.xlu1 %1162 }
0x1ba6   :  { %1485 = vrcp.f32 %v1163_v34 }
0x1ba9   :  { %v1029_v20 = vpop.permute.xlu1 %1028 }
0x1baa   :  { %1031 = vst.msk [vmem:[#allocation3] sm:$0xff] %vm61_vm2, %v1029_v20 }
0x1bb0   :  { %v1486_v35 = vpop.eup %1485 }
0x1bb1   :  { %v1165_v36 = vmul.f32 %v1486_v35, %v1484_v33 }
0x1bb3   :  { %1166 = vst [vmem:[#allocation10] sm:$0xff] %v1165_v36 }
0x1bb4   :  { %1542 = shalt.err (!%p1539_p6)
}
0x1bb5   :  { %s1543_s24 = scalar_lea.hbm %s2009_s8, 128 }
0x1bb6   :  { %p1544_p7 = scmp.ne.s32.totalorder %s2009_s8, %s1543_s24  ;;  %p1547_p8 = scmp.lt.u32.totalorder %s1543_s24, %s2009_s8 }
0x1bb8   :  { %p1549_p9 = pnand %p1547_p8, %p1544_p7 }
0x1bba   :  { %1552 = shalt.err (!%p1549_p9)
}
0x1bbb   :  { %1176 = dma.vmem_to_hbm [thread:$0]  %s1174_s5, 128, %s2009_s8, [#allocation7]  }
0x1bbc   :  { %1557 = dma.done.wait [#allocation7], 128  }
0x1bbd   :  { %1558 = vsyncadd [#allocation7], 4294967168 }
0x1bbe   :  { %1180 = vsyncpa [#allocation6], 1 }
0x1bbf   :  { %1181 = vsyncpa [#allocation9], 1 }
0x1bc0   :  { %1182 = vsyncpa [#allocation7], 1 }

</bundles_post_ra>
